<compile_context>
chip_gen: v7x
topology: tpu7x:2x2x1
jax: 0.10.0
libtpu: 0.0.40
codegen_flags: <defaults>
</compile_context>

<pallas_src>
import jax
import jax.numpy as jnp
from jax.experimental import pallas as pl
from jax.experimental.pallas import tpu as pltpu

EPS = 1e-5

IN_FEATS = 784
IN_FEATS_PAD = 896       # 7 * 128 : lane-aligned K for fc1
H1 = 512
H2 = 128
OUT_FEATS = 10
OUT_FEATS_PAD = 128      # lane-dense output width


def _bn_train_folded(h, gamma, beta):
    """Training-mode BatchNorm1d folded into one scale/shift (per-element: mul+add)."""
    mean = jnp.mean(h, axis=0, keepdims=True)                   # (1, F)
    var = jnp.mean((h - mean) ** 2, axis=0, keepdims=True)      # (1, F), biased
    scale = gamma * jax.lax.rsqrt(var + EPS)                    # (1, F)  (rsqrt -> EUP)
    shift = beta - mean * scale                                 # (1, F)
    return h * scale + shift


def mlp_kernel(x_ref,
               w1_ref, g1_ref, be1_ref,
               w2_ref, g2_ref, be2_ref,
               w3_ref, b3_ref,
               out_ref):
    # fc1 (bias dropped: cancels exactly inside training-mode BN) -> BN -> ReLU
    h1 = jnp.dot(x_ref[...], w1_ref[...],                       # (N,896)bf16 @ (896,512)bf16
                 preferred_element_type=jnp.float32)
    h1 = _bn_train_folded(h1, g1_ref[...], be1_ref[...])
    h1 = jnp.maximum(h1, 0.0)

    # fc2 (bias dropped) -> BN
    h2 = jnp.dot(h1.astype(jnp.bfloat16), w2_ref[...],          # (N,512) @ (512,128)
                 preferred_element_type=jnp.float32)
    h2 = _bn_train_folded(h2, g2_ref[...], be2_ref[...])

    # fc3: lane-dense 128-wide output (cols 10..127 are zero-padded weights/bias)
    out = jnp.dot(h2.astype(jnp.bfloat16), w3_ref[...],         # (N,128) @ (128,128)
                  preferred_element_type=jnp.float32) + b3_ref[...]
    out_ref[...] = out.astype(out_ref.dtype)


def prepare_kernel_params(params):
    """One-time padding / bf16 casting of the matmul operands.

    b1 and b2 are intentionally dropped: a per-feature bias immediately before
    a training-mode BatchNorm has zero observable effect on the output.
    """
    (w1, b1, g1, be1, w2, b2, g2, be2, w3, b3) = params
    del b1, b2
    w1p = jnp.pad(w1, ((0, IN_FEATS_PAD - IN_FEATS), (0, 0))).astype(jnp.bfloat16)
    w2p = w2.astype(jnp.bfloat16)
    w3p = jnp.pad(w3, ((0, 0), (0, OUT_FEATS_PAD - OUT_FEATS))).astype(jnp.bfloat16)
    b3p = jnp.pad(b3, ((0, 0), (0, OUT_FEATS_PAD - OUT_FEATS)))  # stays f32
    return (w1p, g1, be1, w2p, g2, be2, w3p, b3p)


def model_forward(x_nchw, kernel_params):
    n = x_nchw.shape[0]
    (w1p, g1, be1, w2p, g2, be2, w3p, b3p) = kernel_params

    # flatten(1), pad K 784 -> 896 (lane multiple), cast matmul LHS to bf16
    x = x_nchw.reshape(n, -1).astype(jnp.float32)
    x = jnp.pad(x, ((0, 0), (0, IN_FEATS_PAD - IN_FEATS))).astype(jnp.bfloat16)

    vmem = pl.BlockSpec(memory_space=pltpu.MemorySpace.VMEM)
    out_padded = pl.pallas_call(
        mlp_kernel,
        out_shape=jax.ShapeDtypeStruct((n, OUT_FEATS_PAD), jnp.float32),
        in_specs=[vmem] * 9,
        out_specs=vmem,
    )(x, w1p, g1, be1, w2p, g2, be2, w3p, b3p)

    return out_padded[:, :OUT_FEATS]


# ----------------------------------------------------------------------------
# Parameter init (mirrors PyTorch nn.Linear / nn.BatchNorm1d defaults) and a
# pure-JAX reference for correctness checking.
# ----------------------------------------------------------------------------
def init_params(key):
    def linear(key, fan_in, fan_out):
        k_w, k_b = jax.random.split(key)
        bound = 1.0 / jnp.sqrt(fan_in)
        # stored transposed: (fan_in, fan_out) so forward is x @ W
        w = jax.random.uniform(k_w, (fan_in, fan_out), jnp.float32, -bound, bound)
        b = jax.random.uniform(k_b, (1, fan_out), jnp.float32, -bound, bound)
        return w, b

    k1, k2, k3 = jax.random.split(key, 3)
    w1, b1 = linear(k1, IN_FEATS, H1)
    w2, b2 = linear(k2, H1, H2)
    w3, b3 = linear(k3, H2, OUT_FEATS)
    g1 = jnp.ones((1, H1), jnp.float32)
    be1 = jnp.zeros((1, H1), jnp.float32)
    g2 = jnp.ones((1, H2), jnp.float32)
    be2 = jnp.zeros((1, H2), jnp.float32)
    return (w1, b1, g1, be1, w2, b2, g2, be2, w3, b3)


def _bn_ref(h, gamma, beta):
    mean = jnp.mean(h, axis=0, keepdims=True)
    var = jnp.mean((h - mean) ** 2, axis=0, keepdims=True)
    return (h - mean) * jax.lax.rsqrt(var + EPS) * gamma + beta


def reference_forward(x_nchw, params, matmul_dtype=jnp.float32):
    """Full-fidelity reference (includes b1/b2).  matmul_dtype=bfloat16 gives a
    precision-matched reference for tight comparison against the kernel."""
    (w1, b1, g1, be1, w2, b2, g2, be2, w3, b3) = params
    x = x_nchw.reshape(x_nchw.shape[0], -1).astype(jnp.float32)

    def mm(a, b):
        return jnp.dot(a.astype(matmul_dtype), b.astype(matmul_dtype),
                       preferred_element_type=jnp.float32)

    h1 = mm(x, w1) + b1
    h1 = jnp.maximum(_bn_ref(h1, g1, be1), 0.0)
    h2 = mm(h1, w2) + b2
    h2 = _bn_ref(h2, g2, be2)
    return mm(h2, w3) + b3


if __name__ == "__main__":
    key = jax.random.PRNGKey(0)
    k_x, k_p = jax.random.split(key)

    # Small batch; input consistent with 784 = 1*28*28 flattened features (NCHW).
    x = jax.random.normal(k_x, (8, 1, 28, 28), jnp.float32)
    params = init_params(k_p)
    kparams = prepare_kernel_params(params)

    out = model_forward(x, kparams)
    out = jax.block_until_ready(out)
    assert out.shape == (8, 10)

    # Tight check vs. a precision-matched (bf16-matmul) reference that still
    # includes b1/b2 -> also verifies the bias-before-BN cancellation.
    ref_bf16 = reference_forward(x, params, matmul_dtype=jnp.bfloat16)
    assert jnp.allclose(out, ref_bf16, atol=2e-3, rtol=2e-3), \
        float(jnp.max(jnp.abs(out - ref_bf16)))

    # Loose sanity check vs. the full-f32 module semantics.
    ref_f32 = reference_forward(x, params, matmul_dtype=jnp.float32)
    assert jnp.allclose(out, ref_f32, atol=1e-1, rtol=1e-1)

    print("KERNEL_OK")
</pallas_src>

<mosaic_0001>
module attributes {stable_mosaic.version = 11 : i64} {
  func.func @mlp_kernel(%arg0: memref<8x896xbf16, #tpu.memory_space<vmem>>, %arg1: memref<896x512xbf16, #tpu.memory_space<vmem>>, %arg2: memref<1x512xf32, #tpu.memory_space<vmem>>, %arg3: memref<1x512xf32, #tpu.memory_space<vmem>>, %arg4: memref<512x128xbf16, #tpu.memory_space<vmem>>, %arg5: memref<1x128xf32, #tpu.memory_space<vmem>>, %arg6: memref<1x128xf32, #tpu.memory_space<vmem>>, %arg7: memref<128x128xbf16, #tpu.memory_space<vmem>>, %arg8: memref<1x128xf32, #tpu.memory_space<vmem>>, %arg9: memref<8x128xf32, #tpu.memory_space<vmem>>) attributes {dimension_semantics = [], scalar_prefetch = 0 : i64, scratch_operands = 0 : i64, tpu.core_type = #tpu.core_type<tc>} {
    %c0 = arith.constant 0 : index
    %c0_0 = arith.constant 0 : index
    %0 = vector.load %arg0[%c0, %c0_0] : memref<8x896xbf16, #tpu.memory_space<vmem>>, vector<8x896xbf16>
    %c0_1 = arith.constant 0 : index
    %c0_2 = arith.constant 0 : index
    %1 = vector.load %arg1[%c0_1, %c0_2] : memref<896x512xbf16, #tpu.memory_space<vmem>>, vector<896x512xbf16>
    %cst = arith.constant dense<0.000000e+00> : vector<8x512xf32>
    %2 = tpu.matmul %0, %1, %cst {dimension_numbers = #tpu.dot_dimension_numbers<[1], [0], [0], [1], [0, 0, 1, 1], [], []>} : vector<8x896xbf16>, vector<896x512xbf16>, vector<8x512xf32> -> vector<8x512xf32>
    %c0_3 = arith.constant 0 : index
    %c0_4 = arith.constant 0 : index
    %3 = vector.load %arg2[%c0_3, %c0_4] : memref<1x512xf32, #tpu.memory_space<vmem>>, vector<1x512xf32>
    %c0_5 = arith.constant 0 : index
    %c0_6 = arith.constant 0 : index
    %4 = vector.load %arg3[%c0_5, %c0_6] : memref<1x512xf32, #tpu.memory_space<vmem>>, vector<1x512xf32>
    %cst_7 = arith.constant dense<0.000000e+00> : vector<512xf32>
    %5 = vector.multi_reduction <add>, %2, %cst_7 [0] : vector<8x512xf32> to vector<512xf32>
    %6 = vector.shape_cast %5 : vector<512xf32> to vector<1x512xf32>
    %cst_8 = arith.constant 8.000000e+00 : f32
    %7 = vector.broadcast %cst_8 : f32 to vector<1x512xf32>
    %8 = arith.divf %6, %7 : vector<1x512xf32>
    %9 = vector.broadcast %8 : vector<1x512xf32> to vector<8x512xf32>
    %10 = arith.subf %2, %9 : vector<8x512xf32>
    %11 = arith.mulf %10, %10 : vector<8x512xf32>
    %cst_9 = arith.constant dense<0.000000e+00> : vector<512xf32>
    %12 = vector.multi_reduction <add>, %11, %cst_9 [0] : vector<8x512xf32> to vector<512xf32>
    %13 = vector.shape_cast %12 : vector<512xf32> to vector<1x512xf32>
    %cst_10 = arith.constant 8.000000e+00 : f32
    %14 = vector.broadcast %cst_10 : f32 to vector<1x512xf32>
    %15 = arith.divf %13, %14 : vector<1x512xf32>
    %cst_11 = arith.constant 9.99999974E-6 : f32
    %16 = vector.broadcast %cst_11 : f32 to vector<1x512xf32>
    %17 = arith.addf %15, %16 : vector<1x512xf32>
    %18 = math.rsqrt %17 : vector<1x512xf32>
    %19 = arith.mulf %3, %18 : vector<1x512xf32>
    %20 = arith.mulf %8, %19 : vector<1x512xf32>
    %21 = arith.subf %4, %20 : vector<1x512xf32>
    %22 = vector.broadcast %19 : vector<1x512xf32> to vector<8x512xf32>
    %23 = arith.mulf %2, %22 : vector<8x512xf32>
    %24 = vector.broadcast %21 : vector<1x512xf32> to vector<8x512xf32>
    %25 = arith.addf %23, %24 : vector<8x512xf32>
    %cst_12 = arith.constant 0.000000e+00 : f32
    %26 = vector.broadcast %cst_12 : f32 to vector<8x512xf32>
    %27 = arith.maximumf %25, %26 : vector<8x512xf32>
    %28 = arith.truncf %27 : vector<8x512xf32> to vector<8x512xbf16>
    %c0_13 = arith.constant 0 : index
    %c0_14 = arith.constant 0 : index
    %29 = vector.load %arg4[%c0_13, %c0_14] : memref<512x128xbf16, #tpu.memory_space<vmem>>, vector<512x128xbf16>
    %cst_15 = arith.constant dense<0.000000e+00> : vector<8x128xf32>
    %30 = tpu.matmul %28, %29, %cst_15 {dimension_numbers = #tpu.dot_dimension_numbers<[1], [0], [0], [1], [0, 0, 1, 1], [], []>} : vector<8x512xbf16>, vector<512x128xbf16>, vector<8x128xf32> -> vector<8x128xf32>
    %c0_16 = arith.constant 0 : index
    %c0_17 = arith.constant 0 : index
    %31 = vector.load %arg5[%c0_16, %c0_17] : memref<1x128xf32, #tpu.memory_space<vmem>>, vector<1x128xf32>
    %c0_18 = arith.constant 0 : index
    %c0_19 = arith.constant 0 : index
    %32 = vector.load %arg6[%c0_18, %c0_19] : memref<1x128xf32, #tpu.memory_space<vmem>>, vector<1x128xf32>
    %cst_20 = arith.constant dense<0.000000e+00> : vector<128xf32>
    %33 = vector.multi_reduction <add>, %30, %cst_20 [0] : vector<8x128xf32> to vector<128xf32>
    %34 = vector.shape_cast %33 : vector<128xf32> to vector<1x128xf32>
    %cst_21 = arith.constant 8.000000e+00 : f32
    %35 = vector.broadcast %cst_21 : f32 to vector<1x128xf32>
    %36 = arith.divf %34, %35 : vector<1x128xf32>
    %37 = vector.broadcast %36 : vector<1x128xf32> to vector<8x128xf32>
    %38 = arith.subf %30, %37 : vector<8x128xf32>
    %39 = arith.mulf %38, %38 : vector<8x128xf32>
    %cst_22 = arith.constant dense<0.000000e+00> : vector<128xf32>
    %40 = vector.multi_reduction <add>, %39, %cst_22 [0] : vector<8x128xf32> to vector<128xf32>
    %41 = vector.shape_cast %40 : vector<128xf32> to vector<1x128xf32>
    %cst_23 = arith.constant 8.000000e+00 : f32
    %42 = vector.broadcast %cst_23 : f32 to vector<1x128xf32>
    %43 = arith.divf %41, %42 : vector<1x128xf32>
    %cst_24 = arith.constant 9.99999974E-6 : f32
    %44 = vector.broadcast %cst_24 : f32 to vector<1x128xf32>
    %45 = arith.addf %43, %44 : vector<1x128xf32>
    %46 = math.rsqrt %45 : vector<1x128xf32>
    %47 = arith.mulf %31, %46 : vector<1x128xf32>
    %48 = arith.mulf %36, %47 : vector<1x128xf32>
    %49 = arith.subf %32, %48 : vector<1x128xf32>
    %50 = vector.broadcast %47 : vector<1x128xf32> to vector<8x128xf32>
    %51 = arith.mulf %30, %50 : vector<8x128xf32>
    %52 = vector.broadcast %49 : vector<1x128xf32> to vector<8x128xf32>
    %53 = arith.addf %51, %52 : vector<8x128xf32>
    %54 = arith.truncf %53 : vector<8x128xf32> to vector<8x128xbf16>
    %c0_25 = arith.constant 0 : index
    %c0_26 = arith.constant 0 : index
    %55 = vector.load %arg7[%c0_25, %c0_26] : memref<128x128xbf16, #tpu.memory_space<vmem>>, vector<128x128xbf16>
    %cst_27 = arith.constant dense<0.000000e+00> : vector<8x128xf32>
    %56 = tpu.matmul %54, %55, %cst_27 {dimension_numbers = #tpu.dot_dimension_numbers<[1], [0], [0], [1], [0, 0, 1, 1], [], []>} : vector<8x128xbf16>, vector<128x128xbf16>, vector<8x128xf32> -> vector<8x128xf32>
    %c0_28 = arith.constant 0 : index
    %c0_29 = arith.constant 0 : index
    %57 = vector.load %arg8[%c0_28, %c0_29] : memref<1x128xf32, #tpu.memory_space<vmem>>, vector<1x128xf32>
    %58 = vector.broadcast %57 : vector<1x128xf32> to vector<8x128xf32>
    %59 = arith.addf %56, %58 : vector<8x128xf32>
    %c0_30 = arith.constant 0 : index
    %c0_31 = arith.constant 0 : index
    %60 = vector.load %arg9[%c0_30, %c0_31] : memref<8x128xf32, #tpu.memory_space<vmem>>, vector<8x128xf32>
    tpu.vector_store %arg9[%c0_30, %c0_31], %59 {strides = array<i32>} : memref<8x128xf32, #tpu.memory_space<vmem>>, vector<8x128xf32>,
    return
  }
}

</mosaic_0001>

<bundles_post_ra>
// kernel: tpu_custom_call.1
= control target key start
LH: loop header
LB: loop body
LE: loop exit
PB: predicated region body
PF: predicated region fallthrough
CT: control target
= control target key end

     0   :  { %14 = vsyncpa [#allocation3], 0  ;;  %s3577_s0 = inlined_call_operand.hbm [shape: bf16[8,896], index: 0, kind: input, shape index: {}]   ;;  %s3578_s1 = inlined_call_operand.hbm [shape: bf16[896,512], index: 1, kind: input, shape index: {}]   ;;  %s3579_s2 = inlined_call_operand.vmem [shape: f32[1,512], index: 2, kind: input, shape index: {}]   ;;  %s3580_s3 = inlined_call_operand.vmem [shape: f32[1,512], index: 3, kind: input, shape index: {}]   ;;  %s3581_s4 = inlined_call_operand.hbm [shape: bf16[512,128], index: 4, kind: input, shape index: {}]   ;;  %s3582_s5 = inlined_call_operand.vmem [shape: f32[1,128], index: 5, kind: input, shape index: {}]   ;;  %s3583_s6 = inlined_call_operand.vmem [shape: f32[1,128], index: 6, kind: input, shape index: {}]   ;;  %s3584_s7 = inlined_call_operand.hbm [shape: bf16[128,128], index: 7, kind: input, shape index: {}]   ;;  %s3585_s8 = inlined_call_operand.vmem [shape: f32[1,128], index: 8, kind: input, shape index: {}]   ;;  %s3586_s9 = inlined_call_operand.hbm [shape: f32[8,128], index: 9, kind: output, shape index: {}]  }
   0x1   :  { %15 = vsyncpa [#allocation6], 0 }
   0x2   :  { %16 = vsyncpa [#allocation9], 0 }
   0x3   :  { %17 = vsyncpa [#allocation4], 0  ;;  %s3381_s30 = smov [#allocation5]   ;;  %s3263_s13 = scalar_lea.hbm %s3578_s1, 28672 }
   0x4   :  { %s33_s10 = sshll.u32 %s3381_s30, 4  ;;  %p3264_p0 = scmp.ne.s32.totalorder %s3578_s1, %s3263_s13  ;;  %s34_s10 = int_to_ptr.vmem [resolvable:$true] %s33_s10 }
   0x5   :  { %p3267_p1 = scmp.lt.u32.totalorder %s3263_s13, %s3578_s1 }
   0x7   :  { %p3269_p2 = pnand %p3267_p1, %p3264_p0 }
   0x9   :  { %3272 = shalt.err (!%p3269_p2)
}
   0xa   :  { %s3273_s18 = scalar_lea.vmem %s34_s10, 28672  ;;  %p3278_p4 = scmp.lt.s32.totalorder %s34_s10, %s34_s10 }
   0xb   :  { %p3274_p3 = scmp.ne.s32.totalorder %s34_s10, %s3273_s18  ;;  %p3279_p5 = scmp.lt.s32.totalorder %s3273_s18, %s3273_s18 }
   0xd   :  { %p3280_p6 = por %p3279_p5, %p3278_p4 }
   0xf   :  { %p3281_p7 = pnand %p3280_p6, %p3274_p3 }
  0x11   :  { %3284 = shalt.err (!%p3281_p7)
}
  0x12   :  { %s3382_s19 = smov 256   ;;  %s3383_s20 = smov 16  }
  0x13   :  { %39 = dma.hbm_to_vmem [thread:$0]  %s3578_s1, 28672, %s34_s10, [#allocation6], %s3382_s19, %s3382_s19, %s3383_s20  }
  0x14   :  { %s3384_s23 = smov [#allocation2]   ;;  %s3385_s25 = smov [#allocation7]  }
  0x15   :  { %s24_s24 = sshll.u32 %s3384_s23, 4  ;;  %s49_s26 = sshll.u32 %s3385_s25, 4  ;;  %s25_s24 = int_to_ptr.vmem [resolvable:$true] %s24_s24  ;;  %s50_s26 = int_to_ptr.vmem [resolvable:$true] %s49_s26 }
  0x16   :  { %s3285_s29 = scalar_lea.hbm %s3577_s0, 448 }
  0x17   :  { %p3286_p8 = scmp.ne.s32.totalorder %s3577_s0, %s3285_s29  ;;  %p3289_p9 = scmp.lt.u32.totalorder %s3285_s29, %s3577_s0 }
  0x19   :  { %p3291_p10 = pnand %p3289_p9, %p3286_p8 }
  0x1b   :  { %3294 = shalt.err (!%p3291_p10)
}
  0x1c   :  { %s3295_s1 = scalar_lea.vmem %s25_s24, 448  ;;  %p3300_p12 = scmp.lt.s32.totalorder %s25_s24, %s25_s24 }
  0x1d   :  { %p3296_p11 = scmp.ne.s32.totalorder %s25_s24, %s3295_s1  ;;  %p3301_p13 = scmp.lt.s32.totalorder %s3295_s1, %s3295_s1 }
  0x1f   :  { %p3302_p0 = por %p3301_p13, %p3300_p12 }
  0x21   :  { %p3303_p1 = pnand %p3302_p0, %p3296_p11 }
  0x23   :  { %3306 = shalt.err (!%p3303_p1)
}
  0x24   :  { %27 = dma.hbm_to_vmem [thread:$0]  %s3577_s0, 448, %s25_s24, [#allocation3]  }
  0x25   :  { %s3307_s17 = scalar_lea.hbm %s3581_s4, 4096 }
  0x26   :  { %p3308_p2 = scmp.ne.s32.totalorder %s3581_s4, %s3307_s17  ;;  %p3311_p3 = scmp.lt.u32.totalorder %s3307_s17, %s3581_s4 }
  0x28   :  { %p3313_p4 = pnand %p3311_p3, %p3308_p2 }
  0x2a   :  { %3316 = shalt.err (!%p3313_p4)
}
  0x2b   :  { %s3317_s22 = scalar_lea.vmem %s50_s26, 4096  ;;  %p3322_p6 = scmp.lt.s32.totalorder %s50_s26, %s50_s26 }
  0x2c   :  { %p3318_p5 = scmp.ne.s32.totalorder %s50_s26, %s3317_s22  ;;  %p3323_p7 = scmp.lt.s32.totalorder %s3317_s22, %s3317_s22 }
  0x2e   :  { %p3324_p8 = por %p3323_p7, %p3322_p6 }
  0x30   :  { %p3325_p9 = pnand %p3324_p8, %p3318_p5 }
  0x32   :  { %3328 = shalt.err (!%p3325_p9)
}
  0x33   :  { %s3386_s0 = smov 64   ;;  %s3387_s23 = smov 4  }
  0x34   :  { %55 = dma.hbm_to_vmem [thread:$0]  %s3581_s4, 4096, %s50_s26, [#allocation6], %s3386_s0, %s3386_s0, %s3387_s23  }
  0x35   :  { %s3388_s27 = smov [#allocation8]   ;;  %s3329_s11 = scalar_lea.hbm %s3584_s7, 1024 }
  0x36   :  { %s65_s28 = sshll.u32 %s3388_s27, 4  ;;  %p3330_p10 = scmp.ne.s32.totalorder %s3584_s7, %s3329_s11  ;;  %s66_s28 = int_to_ptr.vmem [resolvable:$true] %s65_s28 }
  0x37   :  { %p3333_p11 = scmp.lt.u32.totalorder %s3329_s11, %s3584_s7 }
  0x39   :  { %p3335_p12 = pnand %p3333_p11, %p3330_p10 }
  0x3b   :  { %3338 = shalt.err (!%p3335_p12)
}
  0x3c   :  { %s3339_s14 = scalar_lea.vmem %s66_s28, 1024  ;;  %p3344_p0 = scmp.lt.s32.totalorder %s66_s28, %s66_s28 }
  0x3d   :  { %p3340_p13 = scmp.ne.s32.totalorder %s66_s28, %s3339_s14  ;;  %p3345_p1 = scmp.lt.s32.totalorder %s3339_s14, %s3339_s14 }
  0x3f   :  { %p3346_p2 = por %p3345_p1, %p3344_p0 }
  0x41   :  { %p3347_p3 = pnand %p3346_p2, %p3340_p13 }
  0x43   :  { %3350 = shalt.err (!%p3347_p3)
}
  0x44   :  { %71 = dma.hbm_to_vmem [thread:$0]  %s3584_s7, 1024, %s66_s28, [#allocation9], %s3386_s0, %s3386_s0, %s3387_s23  }
  0x45   :  { %3373 = dma.done.wait [#allocation3], 448  }
  0x46   :  { %3374 = vsyncadd [#allocation3], 4294966848 }
  0x47   :  { %3375 = dma.done.wait [#allocation6], 32768  }
  0x48   :  { %3376 = vsyncadd [#allocation6], 4294934528 }
  0x49   :  { %3377 = dma.done.wait [#allocation9], 1024  }
  0x4a   :  { %3378 = vsyncadd [#allocation9], 4294966272  ;;  %v2870_v0 = vld [vmem:[#allocation5 + $0x4] ss:$16 sps:$4 sm:$0xff]   ;;  %v2872_v1 = vld [vmem:[#allocation5 + $0xc] ss:$16 sps:$4 sm:$0xff]  }
  0x4b   :  { %1460 = vmatprep.subr.bf16.mxu0 %v2870_v0  ;;  %v2874_v2 = vld [vmem:[#allocation5] ss:$16 sps:$4 sm:$0xff]   ;;  %v2875_v3 = vld [vmem:[#allocation5 + $0x8] ss:$16 sps:$4 sm:$0xff]   ;;  %1624 = vmatprep.subr.bf16.mxu1 %v2872_v1  ;;  %v2876_v4 = vld [vmem:[#allocation5 + $0x24] ss:$16 sps:$4 sm:$0xff]  }
  0x4c   :  { %1461 = vmatpush1.bf16.msra.mxu0 %v2874_v2  ;;  %1625 = vmatpush1.bf16.msra.mxu1 %v2875_v3  ;;  %v2878_v5 = vld [vmem:[#allocation5 + $0x2c] ss:$16 sps:$4 sm:$0xff]   ;;  %v2880_v6 = vld [vmem:[#allocation5 + $0x20] ss:$16 sps:$4 sm:$0xff]   ;;  %v2881_v7 = vld [vmem:[#allocation5 + $0x28] ss:$16 sps:$4 sm:$0xff]  }
  0x4d   :  { %1462 = vmatprep.subr.bf16.mxu0 %v2876_v4  ;;  %1626 = vmatprep.subr.bf16.mxu1 %v2878_v5  ;;  %v2882_v8 = vld [vmem:[#allocation5 + $0x44] ss:$16 sps:$4 sm:$0xff]   ;;  %v2884_v9 = vld [vmem:[#allocation5 + $0x4c] ss:$16 sps:$4 sm:$0xff]   ;;  %v2886_v10 = vld [vmem:[#allocation5 + $0x40] ss:$16 sps:$4 sm:$0xff]  }
  0x4e   :  { %v2887_v11 = vld [vmem:[#allocation5 + $0x48] ss:$16 sps:$4 sm:$0xff]   ;;  %v2888_v12 = vld [vmem:[#allocation5 + $0x64] ss:$16 sps:$4 sm:$0xff]   ;;  %v2890_v13 = vld [vmem:[#allocation5 + $0x6c] ss:$16 sps:$4 sm:$0xff]  }
  0x4f   :  { %v2892_v14 = vld [vmem:[#allocation5 + $0x60] ss:$16 sps:$4 sm:$0xff]   ;;  %v2893_v15 = vld [vmem:[#allocation5 + $0x68] ss:$16 sps:$4 sm:$0xff]   ;;  %v2894_v16 = vld [vmem:[#allocation5 + $0x84] ss:$16 sps:$4 sm:$0xff]  }
  0x50   :  { %1463 = vmatpush1.bf16.msra.mxu0 %v2880_v6  ;;  %1627 = vmatpush1.bf16.msra.mxu1 %v2881_v7  ;;  %v2896_v17 = vld [vmem:[#allocation5 + $0x8c] ss:$16 sps:$4 sm:$0xff]   ;;  %v2898_v18 = vld [vmem:[#allocation5 + $0x80] ss:$16 sps:$4 sm:$0xff]   ;;  %v2899_v19 = vld [vmem:[#allocation5 + $0x88] ss:$16 sps:$4 sm:$0xff]  }
  0x51   :  { %1464 = vmatprep.subr.bf16.mxu0 %v2882_v8  ;;  %1628 = vmatprep.subr.bf16.mxu1 %v2884_v9  ;;  %v2900_v20 = vld [vmem:[#allocation5 + $0xa4] ss:$16 sps:$4 sm:$0xff]   ;;  %v2902_v21 = vld [vmem:[#allocation5 + $0xac] ss:$16 sps:$4 sm:$0xff]   ;;  %v2904_v22 = vld [vmem:[#allocation5 + $0xa0] ss:$16 sps:$4 sm:$0xff]  }
  0x52   :  { %v2905_v23 = vld [vmem:[#allocation5 + $0xa8] ss:$16 sps:$4 sm:$0xff]   ;;  %v2906_v24 = vld [vmem:[#allocation5 + $0xc4] ss:$16 sps:$4 sm:$0xff]   ;;  %v2908_v25 = vld [vmem:[#allocation5 + $0xcc] ss:$16 sps:$4 sm:$0xff]  }
  0x53   :  { %v2910_v26 = vld [vmem:[#allocation5 + $0xc0] ss:$16 sps:$4 sm:$0xff]   ;;  %v2911_v27 = vld [vmem:[#allocation5 + $0xc8] ss:$16 sps:$4 sm:$0xff]   ;;  %v2912_v28 = vld [vmem:[#allocation5 + $0xe4] ss:$16 sps:$4 sm:$0xff]  }
  0x54   :  { %1465 = vmatpush1.bf16.msra.mxu0 %v2886_v10  ;;  %1629 = vmatpush1.bf16.msra.mxu1 %v2887_v11  ;;  %v2914_v29 = vld [vmem:[#allocation5 + $0xec] ss:$16 sps:$4 sm:$0xff]   ;;  %v2916_v30 = vld [vmem:[#allocation5 + $0xe0] ss:$16 sps:$4 sm:$0xff]   ;;  %v2917_v31 = vld [vmem:[#allocation5 + $0xe8] ss:$16 sps:$4 sm:$0xff]  }
  0x55   :  { %1466 = vmatprep.subr.bf16.mxu0 %v2888_v12  ;;  %1630 = vmatprep.subr.bf16.mxu1 %v2890_v13  ;;  %v2918_v32 = vld [vmem:[#allocation5 + $0x104] ss:$16 sps:$4 sm:$0xff]   ;;  %v2920_v33 = vld [vmem:[#allocation5 + $0x10c] ss:$16 sps:$4 sm:$0xff]   ;;  %v2922_v34 = vld [vmem:[#allocation5 + $0x100] ss:$16 sps:$4 sm:$0xff]  }
  0x56   :  { %v2923_v35 = vld [vmem:[#allocation5 + $0x108] ss:$16 sps:$4 sm:$0xff]   ;;  %v2924_v36 = vld [vmem:[#allocation5 + $0x124] ss:$16 sps:$4 sm:$0xff]   ;;  %v2926_v37 = vld [vmem:[#allocation5 + $0x12c] ss:$16 sps:$4 sm:$0xff]  }
  0x57   :  { %v2928_v38 = vld [vmem:[#allocation5 + $0x120] ss:$16 sps:$4 sm:$0xff]   ;;  %v2929_v39 = vld [vmem:[#allocation5 + $0x128] ss:$16 sps:$4 sm:$0xff]   ;;  %v2930_v40 = vld [vmem:[#allocation5 + $0x144] ss:$16 sps:$4 sm:$0xff]  }
  0x58   :  { %1467 = vmatpush1.bf16.msra.mxu0 %v2892_v14  ;;  %1631 = vmatpush1.bf16.msra.mxu1 %v2893_v15  ;;  %v2932_v41 = vld [vmem:[#allocation5 + $0x14c] ss:$16 sps:$4 sm:$0xff]   ;;  %v2934_v42 = vld [vmem:[#allocation5 + $0x140] ss:$16 sps:$4 sm:$0xff]   ;;  %v2935_v43 = vld [vmem:[#allocation5 + $0x148] ss:$16 sps:$4 sm:$0xff]  }
  0x59   :  { %1468 = vmatprep.subr.bf16.mxu0 %v2894_v16  ;;  %1632 = vmatprep.subr.bf16.mxu1 %v2896_v17  ;;  %v2936_v44 = vld [vmem:[#allocation5 + $0x164] ss:$16 sps:$4 sm:$0xff]   ;;  %v2938_v45 = vld [vmem:[#allocation5 + $0x16c] ss:$16 sps:$4 sm:$0xff]   ;;  %v2940_v47 = vld [vmem:[#allocation5 + $0x160] ss:$16 sps:$4 sm:$0xff]  }
  0x5a   :  { %v87_v46 = vld [vmem:[#allocation2] sm:$0xff]  ;;  %v2944_v51 = vld [vmem:[#allocation5 + $0x18c] ss:$16 sps:$4 sm:$0xff]   ;;  %v2946_v52 = vld [vmem:[#allocation5 + $0x180] ss:$16 sps:$4 sm:$0xff]   ;;  %vm3392_vm0 = vmmov 0  }
  0x5b   :  { %v2489_v48 = vcombine.high %v87_v46, %v87_v46  ;;  %v2941_v49 = vld [vmem:[#allocation5 + $0x168] ss:$16 sps:$4 sm:$0xff]   ;;  %v2942_v50 = vld [vmem:[#allocation5 + $0x184] ss:$16 sps:$4 sm:$0xff]   ;;  %v2950_v55 = vld [vmem:[#allocation5 + $0x1ac] ss:$16 sps:$4 sm:$0xff]   ;;  %v2488_v4 = vcombine.low %v87_v46, %v87_v46 }
  0x5c   :  { %1469 = vmatpush1.bf16.msra.mxu0 %v2898_v18  ;;  %1633 = vmatpush1.bf16.msra.mxu1 %v2899_v19  ;;  %v2947_v53 = vld [vmem:[#allocation5 + $0x188] ss:$16 sps:$4 sm:$0xff]   ;;  %v2948_v54 = vld [vmem:[#allocation5 + $0x1a4] ss:$16 sps:$4 sm:$0xff]   ;;  %v2952_v56 = vld [vmem:[#allocation5 + $0x1a0] ss:$16 sps:$4 sm:$0xff]  }
  0x5d   :  { %1470 = vmatprep.subr.bf16.mxu0 %v2900_v20  ;;  %1634 = vmatprep.subr.bf16.mxu1 %v2902_v21  ;;  %v2953_v57 = vld [vmem:[#allocation5 + $0x1a8] ss:$16 sps:$4 sm:$0xff]   ;;  %v2954_v58 = vld [vmem:[#allocation5 + $0x1c4] ss:$16 sps:$4 sm:$0xff]   ;;  %v2956_v59 = vld [vmem:[#allocation5 + $0x1cc] ss:$16 sps:$4 sm:$0xff]  }
  0x5e   :  { %1492 = vmatprep.mubr.bf16.mxu0 %v2489_v48  ;;  %1656 = vmatprep.mubr.bf16.mxu1 %v2489_v48  ;;  %v2958_v60 = vld [vmem:[#allocation5 + $0x1c0] ss:$16 sps:$4 sm:$0xff]   ;;  %v2959_v61 = vld [vmem:[#allocation5 + $0x1c8] ss:$16 sps:$4 sm:$0xff]   ;;  %v2960_v62 = vld [vmem:[#allocation5 + $0x1e4] ss:$16 sps:$4 sm:$0xff]  }
  0x5f   :  { %v2962_v63 = vld [vmem:[#allocation5 + $0x1ec] ss:$16 sps:$4 sm:$0xff]   ;;  %v2964_v0 = vld [vmem:[#allocation5 + $0x1e0] ss:$16 sps:$4 sm:$0xff]   ;;  %v2965_v1 = vld [vmem:[#allocation5 + $0x1e8] ss:$16 sps:$4 sm:$0xff]  }
  0x60   :  { %1471 = vmatpush1.bf16.msra.mxu0 %v2904_v22  ;;  %1635 = vmatpush1.bf16.msra.mxu1 %v2905_v23  ;;  %v2970_v2 = vld [vmem:[#allocation5 + $0x204] ss:$16 sps:$4 sm:$0xff]   ;;  %v2973_v3 = vld [vmem:[#allocation5 + $0x20c] ss:$16 sps:$4 sm:$0xff]   ;;  %v2968_v5 = vld [vmem:[#allocation5 + $0x200] ss:$16 sps:$4 sm:$0xff]  }
  0x61   :  { %1472 = vmatprep.subr.bf16.mxu0 %v2906_v24  ;;  %1636 = vmatprep.subr.bf16.mxu1 %v2908_v25  ;;  %v2971_v6 = vld [vmem:[#allocation5 + $0x208] ss:$16 sps:$4 sm:$0xff]   ;;  %v2976_v7 = vld [vmem:[#allocation5 + $0x224] ss:$16 sps:$4 sm:$0xff]   ;;  %v2979_v8 = vld [vmem:[#allocation5 + $0x22c] ss:$16 sps:$4 sm:$0xff]  }
  0x62   :  { %v2974_v9 = vld [vmem:[#allocation5 + $0x220] ss:$16 sps:$4 sm:$0xff]   ;;  %v2977_v10 = vld [vmem:[#allocation5 + $0x228] ss:$16 sps:$4 sm:$0xff]   ;;  %v2982_v11 = vld [vmem:[#allocation5 + $0x244] ss:$16 sps:$4 sm:$0xff]  }
  0x63   :  { %v2985_v12 = vld [vmem:[#allocation5 + $0x24c] ss:$16 sps:$4 sm:$0xff]   ;;  %v2980_v13 = vld [vmem:[#allocation5 + $0x240] ss:$16 sps:$4 sm:$0xff]   ;;  %v2983_v14 = vld [vmem:[#allocation5 + $0x248] ss:$16 sps:$4 sm:$0xff]  }
  0x64   :  { %1473 = vmatpush1.bf16.msra.mxu0 %v2910_v26  ;;  %1637 = vmatpush1.bf16.msra.mxu1 %v2911_v27  ;;  %v2988_v15 = vld [vmem:[#allocation5 + $0x264] ss:$16 sps:$4 sm:$0xff]   ;;  %v2991_v16 = vld [vmem:[#allocation5 + $0x26c] ss:$16 sps:$4 sm:$0xff]   ;;  %v2986_v17 = vld [vmem:[#allocation5 + $0x260] ss:$16 sps:$4 sm:$0xff]  }
  0x65   :  { %1474 = vmatprep.subr.bf16.mxu0 %v2912_v28  ;;  %1638 = vmatprep.subr.bf16.mxu1 %v2914_v29  ;;  %v2989_v18 = vld [vmem:[#allocation5 + $0x268] ss:$16 sps:$4 sm:$0xff]   ;;  %v2994_v19 = vld [vmem:[#allocation5 + $0x284] ss:$16 sps:$4 sm:$0xff]   ;;  %v2997_v20 = vld [vmem:[#allocation5 + $0x28c] ss:$16 sps:$4 sm:$0xff]  }
  0x66   :  { %v2992_v21 = vld [vmem:[#allocation5 + $0x280] ss:$16 sps:$4 sm:$0xff]   ;;  %v2995_v22 = vld [vmem:[#allocation5 + $0x288] ss:$16 sps:$4 sm:$0xff]   ;;  %v3000_v23 = vld [vmem:[#allocation5 + $0x2a4] ss:$16 sps:$4 sm:$0xff]  }
  0x67   :  { %v3003_v24 = vld [vmem:[#allocation5 + $0x2ac] ss:$16 sps:$4 sm:$0xff]   ;;  %v2998_v25 = vld [vmem:[#allocation5 + $0x2a0] ss:$16 sps:$4 sm:$0xff]   ;;  %v3001_v26 = vld [vmem:[#allocation5 + $0x2a8] ss:$16 sps:$4 sm:$0xff]  }
  0x68   :  { %1475 = vmatpush1.bf16.msra.mxu0 %v2916_v30  ;;  %1639 = vmatpush1.bf16.msra.mxu1 %v2917_v31  ;;  %v3006_v27 = vld [vmem:[#allocation5 + $0x2c4] ss:$16 sps:$4 sm:$0xff]   ;;  %v3009_v28 = vld [vmem:[#allocation5 + $0x2cc] ss:$16 sps:$4 sm:$0xff]   ;;  %v3004_v31 = vld [vmem:[#allocation5 + $0x2c0] ss:$16 sps:$4 sm:$0xff]  }
  0x69   :  { %1476 = vmatprep.subr.bf16.mxu0 %v2918_v32  ;;  %1640 = vmatprep.subr.bf16.mxu1 %v2920_v33  ;;  %v3492_v29 = vld [vmem:[#allocation2 + $0x8] sm:$0xff]  ;;  %v3007_v32 = vld [vmem:[#allocation5 + $0x2c8] ss:$16 sps:$4 sm:$0xff]   ;;  %v3012_v33 = vld [vmem:[#allocation5 + $0x2e4] ss:$16 sps:$4 sm:$0xff]  }
  0x6a   :  { %v2491_v30 = vcombine.high %v3492_v29, %v3492_v29  ;;  %v3033_v46 = vld [vmem:[#allocation5 + $0x34c] ss:$16 sps:$4 sm:$0xff]   ;;  %v3031_v48 = vld [vmem:[#allocation5 + $0x348] ss:$16 sps:$4 sm:$0xff]  }
  0x6c   :  { %1477 = vmatpush1.bf16.msra.mxu0 %v2922_v34  ;;  %1641 = vmatpush1.bf16.msra.mxu1 %v2923_v35  ;;  %v3015_v34 = vld [vmem:[#allocation5 + $0x2ec] ss:$16 sps:$4 sm:$0xff]   ;;  %v3010_v35 = vld [vmem:[#allocation5 + $0x2e0] ss:$16 sps:$4 sm:$0xff]  }
  0x6d   :  { %1478 = vmatprep.subr.bf16.mxu0 %v2924_v36  ;;  %1642 = vmatprep.subr.bf16.mxu1 %v2926_v37  ;;  %v3013_v36 = vld [vmem:[#allocation5 + $0x2e8] ss:$16 sps:$4 sm:$0xff]   ;;  %v3018_v37 = vld [vmem:[#allocation5 + $0x304] ss:$16 sps:$4 sm:$0xff]  }
  0x70   :  { %1479 = vmatpush1.bf16.msra.mxu0 %v2928_v38  ;;  %1643 = vmatpush1.bf16.msra.mxu1 %v2929_v39  ;;  %v3021_v38 = vld [vmem:[#allocation5 + $0x30c] ss:$16 sps:$4 sm:$0xff]   ;;  %v3016_v39 = vld [vmem:[#allocation5 + $0x300] ss:$16 sps:$4 sm:$0xff]  }
  0x71   :  { %1480 = vmatprep.subr.bf16.mxu0 %v2930_v40  ;;  %1644 = vmatprep.subr.bf16.mxu1 %v2932_v41  ;;  %v3019_v40 = vld [vmem:[#allocation5 + $0x308] ss:$16 sps:$4 sm:$0xff]   ;;  %v3024_v41 = vld [vmem:[#allocation5 + $0x324] ss:$16 sps:$4 sm:$0xff]  }
  0x74   :  { %1481 = vmatpush1.bf16.msra.mxu0 %v2934_v42  ;;  %1645 = vmatpush1.bf16.msra.mxu1 %v2935_v43  ;;  %v3027_v42 = vld [vmem:[#allocation5 + $0x32c] ss:$16 sps:$4 sm:$0xff]   ;;  %v3022_v43 = vld [vmem:[#allocation5 + $0x320] ss:$16 sps:$4 sm:$0xff]  }
  0x75   :  { %1482 = vmatprep.subr.bf16.mxu0 %v2936_v44  ;;  %1646 = vmatprep.subr.bf16.mxu1 %v2938_v45  ;;  %v3025_v44 = vld [vmem:[#allocation5 + $0x328] ss:$16 sps:$4 sm:$0xff]   ;;  %v3030_v45 = vld [vmem:[#allocation5 + $0x344] ss:$16 sps:$4 sm:$0xff]  }
  0x78   :  { %1483 = vmatpush1.bf16.msra.mxu0 %v2940_v47  ;;  %1647 = vmatpush1.bf16.msra.mxu1 %v2941_v49  ;;  %v3028_v47 = vld [vmem:[#allocation5 + $0x340] ss:$16 sps:$4 sm:$0xff]   ;;  %v3036_v49 = vld [vmem:[#allocation5 + $0x364] ss:$16 sps:$4 sm:$0xff]  }
  0x79   :  { %1484 = vmatprep.subr.bf16.mxu0 %v2942_v50  ;;  %1648 = vmatprep.subr.bf16.mxu1 %v2944_v51  ;;  %v3039_v50 = vld [vmem:[#allocation5 + $0x36c] ss:$16 sps:$4 sm:$0xff]   ;;  %v3034_v51 = vld [vmem:[#allocation5 + $0x360] ss:$16 sps:$4 sm:$0xff]  }
  0x7c   :  { %1485 = vmatpush1.bf16.msra.mxu0 %v2946_v52  ;;  %1649 = vmatpush1.bf16.msra.mxu1 %v2947_v53  ;;  %v3037_v52 = vld [vmem:[#allocation5 + $0x368] ss:$16 sps:$4 sm:$0xff]   ;;  %v3042_v53 = vld [vmem:[#allocation5 + $0x384] ss:$16 sps:$4 sm:$0xff]  }
  0x7d   :  { %1486 = vmatprep.subr.bf16.mxu0 %v2948_v54  ;;  %1650 = vmatprep.subr.bf16.mxu1 %v2950_v55  ;;  %v3045_v54 = vld [vmem:[#allocation5 + $0x38c] ss:$16 sps:$4 sm:$0xff]   ;;  %v3040_v55 = vld [vmem:[#allocation5 + $0x380] ss:$16 sps:$4 sm:$0xff]  }
  0x80   :  { %1487 = vmatpush1.bf16.msra.mxu0 %v2952_v56  ;;  %1651 = vmatpush1.bf16.msra.mxu1 %v2953_v57  ;;  %v3043_v56 = vld [vmem:[#allocation5 + $0x388] ss:$16 sps:$4 sm:$0xff]   ;;  %v3048_v57 = vld [vmem:[#allocation5 + $0x3a4] ss:$16 sps:$4 sm:$0xff]  }
  0x81   :  { %1488 = vmatprep.subr.bf16.mxu0 %v2954_v58  ;;  %1652 = vmatprep.subr.bf16.mxu1 %v2956_v59  ;;  %v3051_v58 = vld [vmem:[#allocation5 + $0x3ac] ss:$16 sps:$4 sm:$0xff]   ;;  %v3046_v59 = vld [vmem:[#allocation5 + $0x3a0] ss:$16 sps:$4 sm:$0xff]  }
  0x84   :  { %1489 = vmatpush1.bf16.msra.mxu0 %v2958_v60  ;;  %1653 = vmatpush1.bf16.msra.mxu1 %v2959_v61  ;;  %v3049_v60 = vld [vmem:[#allocation5 + $0x3a8] ss:$16 sps:$4 sm:$0xff]   ;;  %v3054_v61 = vld [vmem:[#allocation5 + $0x3c4] ss:$16 sps:$4 sm:$0xff]  }
  0x85   :  { %1490 = vmatprep.subr.bf16.mxu0 %v2960_v62  ;;  %1654 = vmatprep.subr.bf16.mxu1 %v2962_v63  ;;  %v3057_v62 = vld [vmem:[#allocation5 + $0x3cc] ss:$16 sps:$4 sm:$0xff]   ;;  %v3052_v63 = vld [vmem:[#allocation5 + $0x3c0] ss:$16 sps:$4 sm:$0xff]  }
  0x88   :  { %1491 = vmatpush1.bf16.msra.mxu0 %v2964_v0  ;;  %1655 = vmatpush1.bf16.msra.mxu1 %v2965_v1  ;;  %v3055_v0 = vld [vmem:[#allocation5 + $0x3c8] ss:$16 sps:$4 sm:$0xff]   ;;  %v3060_v1 = vld [vmem:[#allocation5 + $0x3e4] ss:$16 sps:$4 sm:$0xff]  }
  0x89   :  { %1501 = vmatprep.subr.bf16.mxu0 %v2970_v2  ;;  %1665 = vmatprep.subr.bf16.mxu1 %v2973_v3  ;;  %v3063_v2 = vld [vmem:[#allocation5 + $0x3ec] ss:$16 sps:$4 sm:$0xff]   ;;  %v3058_v3 = vld [vmem:[#allocation5 + $0x3e0] ss:$16 sps:$4 sm:$0xff]  }
  0x8b   :  { %1493 = vmatmul.mubr.bf16.vlgmr.msra.gmra.mrb[0].mxu0 %v2488_v4  ;;  %1657 = vmatmul.mubr.bf16.vlgmr.msra.gmra.mrb[0].mxu1 %v2488_v4  ;;  %v3061_v4 = vld [vmem:[#allocation5 + $0x3e8] ss:$16 sps:$4 sm:$0xff]  }
  0x8c   :  { %1502 = vmatpush1.bf16.msra.mxu0 %v2968_v5  ;;  %1666 = vmatpush1.bf16.msra.mxu1 %v2971_v6  ;;  %v3068_v5 = vld [vmem:[#allocation5 + $0x404] ss:$16 sps:$4 sm:$0xff]   ;;  %v3071_v6 = vld [vmem:[#allocation5 + $0x40c] ss:$16 sps:$4 sm:$0xff]  }
  0x8d   :  { %1503 = vmatprep.subr.bf16.mxu0 %v2976_v7  ;;  %1667 = vmatprep.subr.bf16.mxu1 %v2979_v8  ;;  %v2490_v7 = vcombine.low %v3492_v29, %v3492_v29  ;;  %v3066_v8 = vld [vmem:[#allocation5 + $0x400] ss:$16 sps:$4 sm:$0xff]   ;;  %v3101_v29 = vld [vmem:[#allocation5 + $0x4ac] ss:$16 sps:$4 sm:$0xff]  }
  0x8e   :  { %1533 = vmatprep.mubr.bf16.mxu0 %v2491_v30  ;;  %1697 = vmatprep.mubr.bf16.mxu1 %v2491_v30  ;;  %v3096_v30 = vld [vmem:[#allocation5 + $0x4a0] ss:$16 sps:$4 sm:$0xff]  }
  0x90   :  { %1504 = vmatpush1.bf16.msra.mxu0 %v2974_v9  ;;  %1668 = vmatpush1.bf16.msra.mxu1 %v2977_v10  ;;  %v3069_v9 = vld [vmem:[#allocation5 + $0x408] ss:$16 sps:$4 sm:$0xff]   ;;  %v3074_v10 = vld [vmem:[#allocation5 + $0x424] ss:$16 sps:$4 sm:$0xff]  }
  0x91   :  { %1505 = vmatprep.subr.bf16.mxu0 %v2982_v11  ;;  %1669 = vmatprep.subr.bf16.mxu1 %v2985_v12  ;;  %v3498_v11 = vld [vmem:[#allocation2 + $0x10] sm:$0xff]  ;;  %v3077_v12 = vld [vmem:[#allocation5 + $0x42c] ss:$16 sps:$4 sm:$0xff]  }
  0x94   :  { %1506 = vmatpush1.bf16.msra.mxu0 %v2980_v13  ;;  %1670 = vmatpush1.bf16.msra.mxu1 %v2983_v14  ;;  %v2493_v13 = vcombine.high %v3498_v11, %v3498_v11  ;;  %v3072_v14 = vld [vmem:[#allocation5 + $0x420] ss:$16 sps:$4 sm:$0xff]  }
  0x95   :  { %1507 = vmatprep.subr.bf16.mxu0 %v2988_v15  ;;  %1671 = vmatprep.subr.bf16.mxu1 %v2991_v16  ;;  %v3075_v15 = vld [vmem:[#allocation5 + $0x428] ss:$16 sps:$4 sm:$0xff]   ;;  %v3080_v16 = vld [vmem:[#allocation5 + $0x444] ss:$16 sps:$4 sm:$0xff]  }
  0x98   :  { %1508 = vmatpush1.bf16.msra.mxu0 %v2986_v17  ;;  %1672 = vmatpush1.bf16.msra.mxu1 %v2989_v18  ;;  %v3083_v17 = vld [vmem:[#allocation5 + $0x44c] ss:$16 sps:$4 sm:$0xff]   ;;  %v3078_v18 = vld [vmem:[#allocation5 + $0x440] ss:$16 sps:$4 sm:$0xff]  }
  0x99   :  { %1509 = vmatprep.subr.bf16.mxu0 %v2994_v19  ;;  %1673 = vmatprep.subr.bf16.mxu1 %v2997_v20  ;;  %v3081_v19 = vld [vmem:[#allocation5 + $0x448] ss:$16 sps:$4 sm:$0xff]   ;;  %v3086_v20 = vld [vmem:[#allocation5 + $0x464] ss:$16 sps:$4 sm:$0xff]  }
  0x9c   :  { %1510 = vmatpush1.bf16.msra.mxu0 %v2992_v21  ;;  %1674 = vmatpush1.bf16.msra.mxu1 %v2995_v22  ;;  %v3089_v21 = vld [vmem:[#allocation5 + $0x46c] ss:$16 sps:$4 sm:$0xff]   ;;  %v3084_v22 = vld [vmem:[#allocation5 + $0x460] ss:$16 sps:$4 sm:$0xff]  }
  0x9d   :  { %1511 = vmatprep.subr.bf16.mxu0 %v3000_v23  ;;  %1675 = vmatprep.subr.bf16.mxu1 %v3003_v24  ;;  %v3087_v23 = vld [vmem:[#allocation5 + $0x468] ss:$16 sps:$4 sm:$0xff]   ;;  %v3092_v24 = vld [vmem:[#allocation5 + $0x484] ss:$16 sps:$4 sm:$0xff]  }
  0xa0   :  { %1512 = vmatpush1.bf16.msra.mxu0 %v2998_v25  ;;  %1676 = vmatpush1.bf16.msra.mxu1 %v3001_v26  ;;  %v3095_v25 = vld [vmem:[#allocation5 + $0x48c] ss:$16 sps:$4 sm:$0xff]   ;;  %v3090_v26 = vld [vmem:[#allocation5 + $0x480] ss:$16 sps:$4 sm:$0xff]  }
  0xa1   :  { %1513 = vmatprep.subr.bf16.mxu0 %v3006_v27  ;;  %1677 = vmatprep.subr.bf16.mxu1 %v3009_v28  ;;  %v3093_v27 = vld [vmem:[#allocation5 + $0x488] ss:$16 sps:$4 sm:$0xff]   ;;  %v3098_v28 = vld [vmem:[#allocation5 + $0x4a4] ss:$16 sps:$4 sm:$0xff]  }
  0xa4   :  { %1514 = vmatpush1.bf16.msra.mxu0 %v3004_v31  ;;  %1678 = vmatpush1.bf16.msra.mxu1 %v3007_v32  ;;  %v3099_v31 = vld [vmem:[#allocation5 + $0x4a8] ss:$16 sps:$4 sm:$0xff]   ;;  %v3104_v32 = vld [vmem:[#allocation5 + $0x4c4] ss:$16 sps:$4 sm:$0xff]  }
  0xa5   :  { %1515 = vmatprep.subr.bf16.mxu0 %v3012_v33  ;;  %1679 = vmatprep.subr.bf16.mxu1 %v3015_v34  ;;  %v3107_v33 = vld [vmem:[#allocation5 + $0x4cc] ss:$16 sps:$4 sm:$0xff]   ;;  %v3102_v34 = vld [vmem:[#allocation5 + $0x4c0] ss:$16 sps:$4 sm:$0xff]  }
  0xa8   :  { %1516 = vmatpush1.bf16.msra.mxu0 %v3010_v35  ;;  %1680 = vmatpush1.bf16.msra.mxu1 %v3013_v36  ;;  %v3105_v35 = vld [vmem:[#allocation5 + $0x4c8] ss:$16 sps:$4 sm:$0xff]   ;;  %v3110_v36 = vld [vmem:[#allocation5 + $0x4e4] ss:$16 sps:$4 sm:$0xff]  }
  0xa9   :  { %1517 = vmatprep.subr.bf16.mxu0 %v3018_v37  ;;  %1681 = vmatprep.subr.bf16.mxu1 %v3021_v38  ;;  %v3113_v37 = vld [vmem:[#allocation5 + $0x4ec] ss:$16 sps:$4 sm:$0xff]   ;;  %v3108_v38 = vld [vmem:[#allocation5 + $0x4e0] ss:$16 sps:$4 sm:$0xff]  }
  0xac   :  { %1518 = vmatpush1.bf16.msra.mxu0 %v3016_v39  ;;  %1682 = vmatpush1.bf16.msra.mxu1 %v3019_v40  ;;  %v3111_v39 = vld [vmem:[#allocation5 + $0x4e8] ss:$16 sps:$4 sm:$0xff]   ;;  %v3116_v40 = vld [vmem:[#allocation5 + $0x504] ss:$16 sps:$4 sm:$0xff]  }
  0xad   :  { %1519 = vmatprep.subr.bf16.mxu0 %v3024_v41  ;;  %1683 = vmatprep.subr.bf16.mxu1 %v3027_v42  ;;  %v3119_v41 = vld [vmem:[#allocation5 + $0x50c] ss:$16 sps:$4 sm:$0xff]   ;;  %v3114_v42 = vld [vmem:[#allocation5 + $0x500] ss:$16 sps:$4 sm:$0xff]  }
  0xb0   :  { %1520 = vmatpush1.bf16.msra.mxu0 %v3022_v43  ;;  %1684 = vmatpush1.bf16.msra.mxu1 %v3025_v44  ;;  %v3117_v43 = vld [vmem:[#allocation5 + $0x508] ss:$16 sps:$4 sm:$0xff]   ;;  %v3122_v44 = vld [vmem:[#allocation5 + $0x524] ss:$16 sps:$4 sm:$0xff]  }
  0xb1   :  { %1521 = vmatprep.subr.bf16.mxu0 %v3030_v45  ;;  %1685 = vmatprep.subr.bf16.mxu1 %v3033_v46  ;;  %v3125_v45 = vld [vmem:[#allocation5 + $0x52c] ss:$16 sps:$4 sm:$0xff]   ;;  %v3120_v46 = vld [vmem:[#allocation5 + $0x520] ss:$16 sps:$4 sm:$0xff]  }
  0xb4   :  { %1522 = vmatpush1.bf16.msra.mxu0 %v3028_v47  ;;  %1686 = vmatpush1.bf16.msra.mxu1 %v3031_v48  ;;  %v3123_v47 = vld [vmem:[#allocation5 + $0x528] ss:$16 sps:$4 sm:$0xff]   ;;  %v3128_v48 = vld [vmem:[#allocation5 + $0x544] ss:$16 sps:$4 sm:$0xff]  }
  0xb5   :  { %1523 = vmatprep.subr.bf16.mxu0 %v3036_v49  ;;  %1687 = vmatprep.subr.bf16.mxu1 %v3039_v50  ;;  %v3131_v49 = vld [vmem:[#allocation5 + $0x54c] ss:$16 sps:$4 sm:$0xff]   ;;  %v3126_v50 = vld [vmem:[#allocation5 + $0x540] ss:$16 sps:$4 sm:$0xff]  }
  0xb8   :  { %1524 = vmatpush1.bf16.msra.mxu0 %v3034_v51  ;;  %1688 = vmatpush1.bf16.msra.mxu1 %v3037_v52  ;;  %v3129_v51 = vld [vmem:[#allocation5 + $0x548] ss:$16 sps:$4 sm:$0xff]   ;;  %v3134_v52 = vld [vmem:[#allocation5 + $0x564] ss:$16 sps:$4 sm:$0xff]  }
  0xb9   :  { %1525 = vmatprep.subr.bf16.mxu0 %v3042_v53  ;;  %1689 = vmatprep.subr.bf16.mxu1 %v3045_v54  ;;  %v3137_v53 = vld [vmem:[#allocation5 + $0x56c] ss:$16 sps:$4 sm:$0xff]   ;;  %v3132_v54 = vld [vmem:[#allocation5 + $0x560] ss:$16 sps:$4 sm:$0xff]  }
  0xbc   :  { %1526 = vmatpush1.bf16.msra.mxu0 %v3040_v55  ;;  %1690 = vmatpush1.bf16.msra.mxu1 %v3043_v56  ;;  %v3135_v55 = vld [vmem:[#allocation5 + $0x568] ss:$16 sps:$4 sm:$0xff]   ;;  %v3140_v56 = vld [vmem:[#allocation5 + $0x584] ss:$16 sps:$4 sm:$0xff]  }
  0xbd   :  { %1527 = vmatprep.subr.bf16.mxu0 %v3048_v57  ;;  %1691 = vmatprep.subr.bf16.mxu1 %v3051_v58  ;;  %v3143_v57 = vld [vmem:[#allocation5 + $0x58c] ss:$16 sps:$4 sm:$0xff]   ;;  %v3138_v58 = vld [vmem:[#allocation5 + $0x580] ss:$16 sps:$4 sm:$0xff]  }
  0xc0   :  { %1528 = vmatpush1.bf16.msra.mxu0 %v3046_v59  ;;  %1692 = vmatpush1.bf16.msra.mxu1 %v3049_v60  ;;  %v3141_v59 = vld [vmem:[#allocation5 + $0x588] ss:$16 sps:$4 sm:$0xff]   ;;  %v3146_v60 = vld [vmem:[#allocation5 + $0x5a4] ss:$16 sps:$4 sm:$0xff]  }
  0xc1   :  { %1529 = vmatprep.subr.bf16.mxu0 %v3054_v61  ;;  %1693 = vmatprep.subr.bf16.mxu1 %v3057_v62  ;;  %v3149_v61 = vld [vmem:[#allocation5 + $0x5ac] ss:$16 sps:$4 sm:$0xff]   ;;  %v3144_v62 = vld [vmem:[#allocation5 + $0x5a0] ss:$16 sps:$4 sm:$0xff]  }
  0xc4   :  { %1530 = vmatpush1.bf16.msra.mxu0 %v3052_v63  ;;  %1694 = vmatpush1.bf16.msra.mxu1 %v3055_v0  ;;  %v3147_v63 = vld [vmem:[#allocation5 + $0x5a8] ss:$16 sps:$4 sm:$0xff]   ;;  %v3152_v0 = vld [vmem:[#allocation5 + $0x5c4] ss:$16 sps:$4 sm:$0xff]  }
  0xc5   :  { %1531 = vmatprep.subr.bf16.mxu0 %v3060_v1  ;;  %1695 = vmatprep.subr.bf16.mxu1 %v3063_v2  ;;  %v3155_v1 = vld [vmem:[#allocation5 + $0x5cc] ss:$16 sps:$4 sm:$0xff]   ;;  %v3150_v2 = vld [vmem:[#allocation5 + $0x5c0] ss:$16 sps:$4 sm:$0xff]  }
  0xc8   :  { %1532 = vmatpush1.bf16.msra.mxu0 %v3058_v3  ;;  %1696 = vmatpush1.bf16.msra.mxu1 %v3061_v4  ;;  %v3153_v3 = vld [vmem:[#allocation5 + $0x5c8] ss:$16 sps:$4 sm:$0xff]   ;;  %v3158_v4 = vld [vmem:[#allocation5 + $0x5e4] ss:$16 sps:$4 sm:$0xff]  }
  0xc9   :  { %1542 = vmatprep.subr.bf16.mxu0 %v3068_v5  ;;  %1706 = vmatprep.subr.bf16.mxu1 %v3071_v6  ;;  %v3161_v5 = vld [vmem:[#allocation5 + $0x5ec] ss:$16 sps:$4 sm:$0xff]   ;;  %v3156_v6 = vld [vmem:[#allocation5 + $0x5e0] ss:$16 sps:$4 sm:$0xff]  }
  0xcb   :  { %1534 = vmatmul.mubr.bf16.vlgmr.msra.gmra.mrb[0].mxu0 %v2490_v7  ;;  %1698 = vmatmul.mubr.bf16.vlgmr.msra.gmra.mrb[0].mxu1 %v2490_v7  ;;  %v3159_v7 = vld [vmem:[#allocation5 + $0x5e8] ss:$16 sps:$4 sm:$0xff]  }
  0xcc   :  { %1543 = vmatpush1.bf16.msra.mxu0 %v3066_v8  ;;  %1707 = vmatpush1.bf16.msra.mxu1 %v3069_v9  ;;  %v3166_v8 = vld [vmem:[#allocation5 + $0x604] ss:$16 sps:$4 sm:$0xff]   ;;  %v3169_v9 = vld [vmem:[#allocation5 + $0x60c] ss:$16 sps:$4 sm:$0xff]  }
  0xcd   :  { %1544 = vmatprep.subr.bf16.mxu0 %v3074_v10  ;;  %1708 = vmatprep.subr.bf16.mxu1 %v3077_v12  ;;  %v2492_v10 = vcombine.low %v3498_v11, %v3498_v11  ;;  %v3164_v12 = vld [vmem:[#allocation5 + $0x600] ss:$16 sps:$4 sm:$0xff]  }
  0xce   :  { %1574 = vmatprep.mubr.bf16.mxu0 %v2493_v13  ;;  %1738 = vmatprep.mubr.bf16.mxu1 %v2493_v13  ;;  %v3167_v13 = vld [vmem:[#allocation5 + $0x608] ss:$16 sps:$4 sm:$0xff]   ;;  %v3176_v11 = vld [vmem:[#allocation5 + $0x640] ss:$16 sps:$4 sm:$0xff]  }
  0xd0   :  { %1545 = vmatpush1.bf16.msra.mxu0 %v3072_v14  ;;  %1709 = vmatpush1.bf16.msra.mxu1 %v3075_v15  ;;  %v3172_v14 = vld [vmem:[#allocation5 + $0x624] ss:$16 sps:$4 sm:$0xff]   ;;  %v3175_v15 = vld [vmem:[#allocation5 + $0x62c] ss:$16 sps:$4 sm:$0xff]  }
  0xd1   :  { %1546 = vmatprep.subr.bf16.mxu0 %v3080_v16  ;;  %1710 = vmatprep.subr.bf16.mxu1 %v3083_v17  ;;  %v3170_v16 = vld [vmem:[#allocation5 + $0x620] ss:$16 sps:$4 sm:$0xff]   ;;  %v3173_v17 = vld [vmem:[#allocation5 + $0x628] ss:$16 sps:$4 sm:$0xff]  }
  0xd4   :  { %1547 = vmatpush1.bf16.msra.mxu0 %v3078_v18  ;;  %1711 = vmatpush1.bf16.msra.mxu1 %v3081_v19  ;;  %v3178_v18 = vld [vmem:[#allocation5 + $0x644] ss:$16 sps:$4 sm:$0xff]   ;;  %v3181_v19 = vld [vmem:[#allocation5 + $0x64c] ss:$16 sps:$4 sm:$0xff]  }
  0xd5   :  { %1548 = vmatprep.subr.bf16.mxu0 %v3086_v20  ;;  %1712 = vmatprep.subr.bf16.mxu1 %v3089_v21  ;;  %v3389_v20 = vmov 0   ;;  %v3179_v21 = vld [vmem:[#allocation5 + $0x648] ss:$16 sps:$4 sm:$0xff]  }
  0xd8   :  { %1549 = vmatpush1.bf16.msra.mxu0 %v3084_v22  ;;  %1713 = vmatpush1.bf16.msra.mxu1 %v3087_v23  ;;  %v3184_v22 = vld [vmem:[#allocation5 + $0x664] ss:$16 sps:$4 sm:$0xff]   ;;  %v3187_v23 = vld [vmem:[#allocation5 + $0x66c] ss:$16 sps:$4 sm:$0xff]  }
  0xd9   :  { %1550 = vmatprep.subr.bf16.mxu0 %v3092_v24  ;;  %1714 = vmatprep.subr.bf16.mxu1 %v3095_v25  ;;  %v3182_v24 = vld [vmem:[#allocation5 + $0x660] ss:$16 sps:$4 sm:$0xff]   ;;  %v3185_v25 = vld [vmem:[#allocation5 + $0x668] ss:$16 sps:$4 sm:$0xff]  }
  0xdc   :  { %1551 = vmatpush1.bf16.msra.mxu0 %v3090_v26  ;;  %1715 = vmatpush1.bf16.msra.mxu1 %v3093_v27  ;;  %v3190_v26 = vld [vmem:[#allocation5 + $0x684] ss:$16 sps:$4 sm:$0xff]   ;;  %v3193_v27 = vld [vmem:[#allocation5 + $0x68c] ss:$16 sps:$4 sm:$0xff]  }
  0xdd   :  { %1552 = vmatprep.subr.bf16.mxu0 %v3098_v28  ;;  %1716 = vmatprep.subr.bf16.mxu1 %v3101_v29  ;;  %v3188_v28 = vld [vmem:[#allocation5 + $0x680] ss:$16 sps:$4 sm:$0xff]   ;;  %v3191_v29 = vld [vmem:[#allocation5 + $0x688] ss:$16 sps:$4 sm:$0xff]  }
  0xe0   :  { %1553 = vmatpush1.bf16.msra.mxu0 %v3096_v30  ;;  %1717 = vmatpush1.bf16.msra.mxu1 %v3099_v31  ;;  %v3196_v30 = vld [vmem:[#allocation5 + $0x6a4] ss:$16 sps:$4 sm:$0xff]   ;;  %v3199_v31 = vld [vmem:[#allocation5 + $0x6ac] ss:$16 sps:$4 sm:$0xff]  }
  0xe1   :  { %1554 = vmatprep.subr.bf16.mxu0 %v3104_v32  ;;  %1718 = vmatprep.subr.bf16.mxu1 %v3107_v33  ;;  %v3194_v32 = vld [vmem:[#allocation5 + $0x6a0] ss:$16 sps:$4 sm:$0xff]   ;;  %v3197_v33 = vld [vmem:[#allocation5 + $0x6a8] ss:$16 sps:$4 sm:$0xff]  }
  0xe4   :  { %1555 = vmatpush1.bf16.msra.mxu0 %v3102_v34  ;;  %1719 = vmatpush1.bf16.msra.mxu1 %v3105_v35  ;;  %v3202_v34 = vld [vmem:[#allocation5 + $0x6c4] ss:$16 sps:$4 sm:$0xff]   ;;  %v3205_v35 = vld [vmem:[#allocation5 + $0x6cc] ss:$16 sps:$4 sm:$0xff]  }
  0xe5   :  { %1556 = vmatprep.subr.bf16.mxu0 %v3110_v36  ;;  %1720 = vmatprep.subr.bf16.mxu1 %v3113_v37  ;;  %v3200_v36 = vld [vmem:[#allocation5 + $0x6c0] ss:$16 sps:$4 sm:$0xff]   ;;  %v3203_v37 = vld [vmem:[#allocation5 + $0x6c8] ss:$16 sps:$4 sm:$0xff]  }
  0xe8   :  { %1557 = vmatpush1.bf16.msra.mxu0 %v3108_v38  ;;  %1721 = vmatpush1.bf16.msra.mxu1 %v3111_v39  ;;  %v3208_v38 = vld [vmem:[#allocation5 + $0x6e4] ss:$16 sps:$4 sm:$0xff]   ;;  %v3211_v39 = vld [vmem:[#allocation5 + $0x6ec] ss:$16 sps:$4 sm:$0xff]  }
  0xe9   :  { %1558 = vmatprep.subr.bf16.mxu0 %v3116_v40  ;;  %1722 = vmatprep.subr.bf16.mxu1 %v3119_v41  ;;  %v3206_v40 = vld [vmem:[#allocation5 + $0x6e0] ss:$16 sps:$4 sm:$0xff]   ;;  %v3209_v41 = vld [vmem:[#allocation5 + $0x6e8] ss:$16 sps:$4 sm:$0xff]  }
  0xec   :  { %1559 = vmatpush1.bf16.msra.mxu0 %v3114_v42  ;;  %1723 = vmatpush1.bf16.msra.mxu1 %v3117_v43  ;;  %v3212_v42 = vld [vmem:[#allocation2 + $0x18] ss:$0 sps:$4 sm:$0xff]   ;;  %v3213_v43 = vld [vmem:[#allocation7 + $0x40] sm:$0xff]  }
  0xed   :  { %1560 = vmatprep.subr.bf16.mxu0 %v3122_v44  ;;  %1724 = vmatprep.subr.bf16.mxu1 %v3125_v45  ;;  %v3214_v44 = vld [vmem:[#allocation7 + $0xc0] sm:$0xff]  }
  0xee   :  { %v3215_v45 = vld [vmem:[#allocation7] sm:$0xff]  }
  0xf0   :  { %1561 = vmatpush1.bf16.msra.mxu0 %v3120_v46  ;;  %1725 = vmatpush1.bf16.msra.mxu1 %v3123_v47  ;;  %v3216_v46 = vld [vmem:[#allocation7 + $0x80] sm:$0xff]   ;;  %v3217_v47 = vld [vmem:[#allocation7 + $0x48] sm:$0xff]  }
  0xf1   :  { %1562 = vmatprep.subr.bf16.mxu0 %v3128_v48  ;;  %1726 = vmatprep.subr.bf16.mxu1 %v3131_v49  ;;  %v3218_v48 = vld [vmem:[#allocation7 + $0xc8] sm:$0xff]  }
  0xf2   :  { %v3219_v49 = vld [vmem:[#allocation7 + $0x8] sm:$0xff]  }
  0xf4   :  { %1563 = vmatpush1.bf16.msra.mxu0 %v3126_v50  ;;  %1727 = vmatpush1.bf16.msra.mxu1 %v3129_v51  ;;  %v3220_v50 = vld [vmem:[#allocation7 + $0x88] sm:$0xff]   ;;  %v3221_v51 = vld [vmem:[#allocation7 + $0x50] sm:$0xff]  }
  0xf5   :  { %1564 = vmatprep.subr.bf16.mxu0 %v3134_v52  ;;  %1728 = vmatprep.subr.bf16.mxu1 %v3137_v53  ;;  %v3222_v52 = vld [vmem:[#allocation7 + $0xd0] sm:$0xff]  }
  0xf6   :  { %v3223_v53 = vld [vmem:[#allocation7 + $0x10] sm:$0xff]  }
  0xf8   :  { %1565 = vmatpush1.bf16.msra.mxu0 %v3132_v54  ;;  %1729 = vmatpush1.bf16.msra.mxu1 %v3135_v55  ;;  %v3224_v54 = vld [vmem:[#allocation7 + $0x90] sm:$0xff]   ;;  %v3225_v55 = vld [vmem:[#allocation7 + $0x58] sm:$0xff]  }
  0xf9   :  { %1566 = vmatprep.subr.bf16.mxu0 %v3140_v56  ;;  %1730 = vmatprep.subr.bf16.mxu1 %v3143_v57  ;;  %v3226_v56 = vld [vmem:[#allocation7 + $0xd8] sm:$0xff]  }
  0xfa   :  { %v3227_v57 = vld [vmem:[#allocation7 + $0x18] sm:$0xff]  }
  0xfc   :  { %1567 = vmatpush1.bf16.msra.mxu0 %v3138_v58  ;;  %1731 = vmatpush1.bf16.msra.mxu1 %v3141_v59  ;;  %v3228_v58 = vld [vmem:[#allocation7 + $0x98] sm:$0xff]   ;;  %v3229_v59 = vld [vmem:[#allocation7 + $0x60] sm:$0xff]  }
  0xfd   :  { %1568 = vmatprep.subr.bf16.mxu0 %v3146_v60  ;;  %1732 = vmatprep.subr.bf16.mxu1 %v3149_v61  ;;  %v3230_v60 = vld [vmem:[#allocation7 + $0xe0] sm:$0xff]  }
  0xfe   :  { %v3231_v61 = vld [vmem:[#allocation7 + $0x20] sm:$0xff]  }
 0x100   :  { %1569 = vmatpush1.bf16.msra.mxu0 %v3144_v62  ;;  %1733 = vmatpush1.bf16.msra.mxu1 %v3147_v63  ;;  %v3232_v62 = vld [vmem:[#allocation7 + $0xa0] sm:$0xff]   ;;  %v3233_v63 = vld [vmem:[#allocation7 + $0x68] sm:$0xff]  }
 0x101   :  { %1570 = vmatprep.subr.bf16.mxu0 %v3152_v0  ;;  %1734 = vmatprep.subr.bf16.mxu1 %v3155_v1  ;;  %v3234_v0 = vld [vmem:[#allocation7 + $0xe8] sm:$0xff]  }
 0x102   :  { %v3235_v1 = vld [vmem:[#allocation7 + $0x28] sm:$0xff]  }
 0x104   :  { %1571 = vmatpush1.bf16.msra.mxu0 %v3150_v2  ;;  %1735 = vmatpush1.bf16.msra.mxu1 %v3153_v3  ;;  %v3236_v2 = vld [vmem:[#allocation7 + $0xa8] sm:$0xff]   ;;  %v3237_v3 = vld [vmem:[#allocation7 + $0x70] sm:$0xff]  }
 0x105   :  { %1572 = vmatprep.subr.bf16.mxu0 %v3158_v4  ;;  %1736 = vmatprep.subr.bf16.mxu1 %v3161_v5  ;;  %v3238_v4 = vld [vmem:[#allocation7 + $0xf0] sm:$0xff]  }
 0x106   :  { %v3239_v5 = vld [vmem:[#allocation7 + $0x30] sm:$0xff]  }
 0x108   :  { %1573 = vmatpush1.bf16.msra.mxu0 %v3156_v6  ;;  %1737 = vmatpush1.bf16.msra.mxu1 %v3159_v7  ;;  %v3240_v6 = vld [vmem:[#allocation7 + $0xb0] sm:$0xff]   ;;  %v3241_v7 = vld [vmem:[#allocation7 + $0x78] sm:$0xff]  }
 0x109   :  { %1583 = vmatprep.subr.bf16.mxu0 %v3166_v8  ;;  %1747 = vmatprep.subr.bf16.mxu1 %v3169_v9  ;;  %v3242_v8 = vld [vmem:[#allocation7 + $0xf8] sm:$0xff]  }
 0x10a   :  { %v3243_v9 = vld [vmem:[#allocation7 + $0x38] sm:$0xff]  }
 0x10b   :  { %1575 = vmatmul.mubr.bf16.vlgmr.msra.gmra.mrb[0].mxu0 %v2492_v10  ;;  %1739 = vmatmul.mubr.bf16.vlgmr.msra.gmra.mrb[0].mxu1 %v2492_v10  ;;  %v3244_v10 = vld [vmem:[#allocation7 + $0xb8] sm:$0xff]  }
 0x10c   :  { %1584 = vmatpush1.bf16.msra.mxu0 %v3164_v12  ;;  %1748 = vmatpush1.bf16.msra.mxu1 %v3167_v13 }
 0x10d   :  { %1585 = vmatprep.subr.bf16.mxu0 %v3172_v14  ;;  %1749 = vmatprep.subr.bf16.mxu1 %v3175_v15 }
 0x10e   :  { %1615 = vmatprep.mubr.bf16.mxu0 %v3389_v20  ;;  %1779 = vmatprep.mubr.bf16.mxu1 %v3389_v20 }
 0x110   :  { %1586 = vmatpush1.bf16.msra.mxu0 %v3170_v16  ;;  %1750 = vmatpush1.bf16.msra.mxu1 %v3173_v17 }
 0x111   :  { %1587 = vmatprep.subr.bf16.mxu0 %v3178_v18  ;;  %1751 = vmatprep.subr.bf16.mxu1 %v3181_v19 }
 0x114   :  { %1588 = vmatpush1.bf16.msra.mxu0 %v3176_v11  ;;  %1752 = vmatpush1.bf16.msra.mxu1 %v3179_v21 }
 0x115   :  { %1589 = vmatprep.subr.bf16.mxu0 %v3184_v22  ;;  %1753 = vmatprep.subr.bf16.mxu1 %v3187_v23 }
 0x118   :  { %1590 = vmatpush1.bf16.msra.mxu0 %v3182_v24  ;;  %1754 = vmatpush1.bf16.msra.mxu1 %v3185_v25 }
 0x119   :  { %1591 = vmatprep.subr.bf16.mxu0 %v3190_v26  ;;  %1755 = vmatprep.subr.bf16.mxu1 %v3193_v27 }
 0x11c   :  { %1592 = vmatpush1.bf16.msra.mxu0 %v3188_v28  ;;  %1756 = vmatpush1.bf16.msra.mxu1 %v3191_v29 }
 0x11d   :  { %1593 = vmatprep.subr.bf16.mxu0 %v3196_v30  ;;  %1757 = vmatprep.subr.bf16.mxu1 %v3199_v31 }
 0x120   :  { %1594 = vmatpush1.bf16.msra.mxu0 %v3194_v32  ;;  %1758 = vmatpush1.bf16.msra.mxu1 %v3197_v33 }
 0x121   :  { %1595 = vmatprep.subr.bf16.mxu0 %v3202_v34  ;;  %1759 = vmatprep.subr.bf16.mxu1 %v3205_v35 }
 0x124   :  { %1596 = vmatpush1.bf16.msra.mxu0 %v3200_v36  ;;  %1760 = vmatpush1.bf16.msra.mxu1 %v3203_v37 }
 0x125   :  { %1597 = vmatprep.subr.bf16.mxu0 %v3208_v38  ;;  %1761 = vmatprep.subr.bf16.mxu1 %v3211_v39 }
 0x128   :  { %1598 = vmatpush1.bf16.msra.mxu0 %v3206_v40  ;;  %1762 = vmatpush1.bf16.msra.mxu1 %v3209_v41 }
 0x129   :  { %2760 = vmatprep.subr.bf16.mxu0 %v3213_v43  ;;  %2782 = vmatprep.subr.bf16.mxu1 %v3214_v44 }
 0x12b   :  { %1616 = vmatmul.mubr.bf16.vlgmr.msra.gmra.mrb[0].mxu0 %v3212_v42  ;;  %1780 = vmatmul.mubr.bf16.vlgmr.msra.gmra.mrb[0].mxu1 %v3212_v42 }
 0x12c   :  { %2761 = vmatpush3.bf16.msra.mxu0 %v3215_v45  ;;  %2783 = vmatpush3.bf16.msra.mxu1 %v3216_v46 }
 0x12d   :  { %2762 = vmatprep.subr.bf16.mxu0 %v3217_v47  ;;  %2784 = vmatprep.subr.bf16.mxu1 %v3218_v48 }
 0x130   :  { %2763 = vmatpush3.bf16.msra.mxu0 %v3219_v49  ;;  %2785 = vmatpush3.bf16.msra.mxu1 %v3220_v50 }
 0x131   :  { %2764 = vmatprep.subr.bf16.mxu0 %v3221_v51  ;;  %2786 = vmatprep.subr.bf16.mxu1 %v3222_v52 }
 0x134   :  { %2765 = vmatpush3.bf16.msra.mxu0 %v3223_v53  ;;  %2787 = vmatpush3.bf16.msra.mxu1 %v3224_v54 }
 0x135   :  { %2766 = vmatprep.subr.bf16.mxu0 %v3225_v55  ;;  %2788 = vmatprep.subr.bf16.mxu1 %v3226_v56 }
 0x138   :  { %2767 = vmatpush3.bf16.msra.mxu0 %v3227_v57  ;;  %2789 = vmatpush3.bf16.msra.mxu1 %v3228_v58 }
 0x139   :  { %2768 = vmatprep.subr.bf16.mxu0 %v3229_v59  ;;  %2790 = vmatprep.subr.bf16.mxu1 %v3230_v60 }
 0x13c   :  { %2769 = vmatpush3.bf16.msra.mxu0 %v3231_v61  ;;  %2791 = vmatpush3.bf16.msra.mxu1 %v3232_v62 }
 0x13d   :  { %2770 = vmatprep.subr.bf16.mxu0 %v3233_v63  ;;  %2792 = vmatprep.subr.bf16.mxu1 %v3234_v0 }
 0x140   :  { %2771 = vmatpush3.bf16.msra.mxu0 %v3235_v1  ;;  %2793 = vmatpush3.bf16.msra.mxu1 %v3236_v2 }
 0x141   :  { %2772 = vmatprep.subr.bf16.mxu0 %v3237_v3  ;;  %2794 = vmatprep.subr.bf16.mxu1 %v3238_v4 }
 0x144   :  { %2773 = vmatpush3.bf16.msra.mxu0 %v3239_v5  ;;  %2795 = vmatpush3.bf16.msra.mxu1 %v3240_v6 }
 0x145   :  { %2774 = vmatprep.subr.bf16.mxu0 %v3241_v7  ;;  %2796 = vmatprep.subr.bf16.mxu1 %v3242_v8 }
 0x148   :  { %2775 = vmatpush3.bf16.msra.mxu0 %v3243_v9  ;;  %2797 = vmatpush3.bf16.msra.mxu1 %v3244_v10 }
 0x1fe   :  { %v3504_v12 = vpop.f32.mrb[0].mxu0  ;;  %v3506_v13 = vpop.f32.mrb[0].mxu1 }
 0x1ff   :  { %v1790_v14 = vrot.slane %v3504_v12, 4  ;;  %v1802_v15 = vrot.slane %v3506_v13, 4  ;;  %v3510_v16 = vpop.f32.mrb[1].mxu0  ;;  %v3512_v17 = vpop.f32.mrb[1].mxu1 }
 0x200   :  { %v1796_v18 = vrot.slane %v3510_v16, 4  ;;  %v1808_v19 = vrot.slane %v3512_v17, 4  ;;  %v1621_v20 = vpop.f32.mrb[2].mxu0  ;;  %v1785_v11 = vpop.f32.mrb[2].mxu1 }
 0x201   :  { %v1791_v21 = vadd.f32 %v1790_v14, %v3504_v12  ;;  %v1803_v22 = vadd.f32 %v1802_v15, %v3506_v13  ;;  %v1622_v23 = vpop.f32.mrb[3].mxu0  ;;  %v1786_v24 = vpop.f32.mrb[3].mxu1 }
 0x202   :  { %v1797_v25 = vadd.f32 %v1796_v18, %v3510_v16  ;;  %v1809_v26 = vadd.f32 %v1808_v19, %v3512_v17 }
 0x203   :  { %v1792_v27 = vrot.slane %v1791_v21, 2  ;;  %v1804_v28 = vrot.slane %v1803_v22, 2 }
 0x204   :  { %v1798_v29 = vrot.slane %v1797_v25, 2  ;;  %v1810_v30 = vrot.slane %v1809_v26, 2 }
 0x205   :  { %v1793_v31 = vadd.f32 %v1792_v27, %v1791_v21  ;;  %v1805_v32 = vadd.f32 %v1804_v28, %v1803_v22  ;;  %v3390_v27 = vmov 1966171168  }
 0x206   :  { %v1799_v33 = vadd.f32 %v1798_v29, %v1797_v25  ;;  %v1811_v34 = vadd.f32 %v1810_v30, %v1809_v26  ;;  %v1870_v28 = vunpack.c.l.s4 %v3390_v27  ;;  %v1872_v29 = vlaneseq  ;;  %v3250_v27 = vld [vmem:[#allocation8 + $0x28] sm:$0xff]  }
 0x207   :  { %v1794_v35 = vrot.slane %v1793_v31, 1  ;;  %v1806_v36 = vrot.slane %v1805_v32, 1 }
 0x208   :  { %v1800_v37 = vrot.slane %v1799_v33, 1  ;;  %v1812_v38 = vrot.slane %v1811_v34, 1  ;;  %v1871_v30 = vunpack.c.0.s8 %v1870_v28  ;;  %v3251_v28 = vld [vmem:[#allocation8 + $0x30] sm:$0xff]  }
 0x209   :  { %v1795_v39 = vadd.f32 %v1794_v35, %v1793_v31  ;;  %v1807_v40 = vadd.f32 %v1806_v36, %v1805_v32  ;;  %v1873_v31 = vshrl.u32 %v1872_v29, 7  ;;  %v3252_v29 = vld [vmem:[#allocation8 + $0x38] sm:$0xff]  }
 0x20a   :  { %v1801_v41 = vadd.f32 %v1800_v37, %v1799_v33  ;;  %v1813_v42 = vadd.f32 %v1812_v38, %v1811_v34 }
 0x20b   :  { %v3520_v43 = vmul.f32 0.125, %v1795_v39  ;;  %v3522_v44 = vmul.f32 0.125, %v1807_v40  ;;  %v1874_v34 = vsub.s32 %v1871_v30, %v1873_v31 }
 0x20c   :  { %v3524_v45 = vmul.f32 0.125, %v1801_v41  ;;  %v3526_v46 = vmul.f32 0.125, %v1813_v42  ;;  %v1788_v42 = vld [vmem:[%s3579_s2] sm:$0xf] }
 0x20d   :  { %v1819_v47 = vsub.f32 %v3504_v12, %v3520_v43  ;;  %v1821_v48 = vsub.f32 %v3506_v13, %v3522_v44 }
 0x20e   :  { %v1820_v49 = vsub.f32 %v3510_v16, %v3524_v45  ;;  %v1822_v50 = vsub.f32 %v3512_v17, %v3526_v46 }
 0x20f   :  { %v1823_v51 = vmul.f32 %v1819_v47, %v1819_v47  ;;  %v1825_v52 = vmul.f32 %v1821_v48, %v1821_v48  ;;  %v1904_v47 = vsub.s32 2, %v1873_v31 }
 0x210   :  { %v1824_v53 = vmul.f32 %v1820_v49, %v1820_v49  ;;  %v1826_v54 = vmul.f32 %v1822_v50, %v1822_v50  ;;  %v1908_v49 = vsub.s32 3, %v1873_v31  ;;  %v3539_v50 = vsub.s32 0, %v1873_v31 }
 0x211   :  { %v1827_v55 = vrot.slane %v1823_v51, 4  ;;  %v1839_v56 = vrot.slane %v1825_v52, 4 }
 0x212   :  { %v1833_v57 = vrot.slane %v1824_v53, 4  ;;  %v1845_v58 = vrot.slane %v1826_v54, 4 }
 0x213   :  { %v1828_v59 = vadd.f32 %v1827_v55, %v1823_v51  ;;  %v1840_v60 = vadd.f32 %v1839_v56, %v1825_v52  ;;  %v1900_v51 = vsub.s32 1, %v1873_v31 }
 0x214   :  { %v1834_v61 = vadd.f32 %v1833_v57, %v1824_v53  ;;  %v1846_v62 = vadd.f32 %v1845_v58, %v1826_v54 }
 0x215   :  { %v1829_v63 = vrot.slane %v1828_v59, 2  ;;  %v1841_v0 = vrot.slane %v1840_v60, 2 }
 0x216   :  { %v1835_v1 = vrot.slane %v1834_v61, 2  ;;  %v1847_v2 = vrot.slane %v1846_v62, 2 }
 0x217   :  { %v1830_v3 = vadd.f32 %v1829_v63, %v1828_v59  ;;  %v1842_v4 = vadd.f32 %v1841_v0, %v1840_v60 }
 0x218   :  { %v1836_v5 = vadd.f32 %v1835_v1, %v1834_v61  ;;  %v1848_v6 = vadd.f32 %v1847_v2, %v1846_v62 }
 0x219   :  { %v1831_v7 = vrot.slane %v1830_v3, 1  ;;  %v1843_v8 = vrot.slane %v1842_v4, 1 }
 0x21a   :  { %v1837_v9 = vrot.slane %v1836_v5, 1  ;;  %v1849_v10 = vrot.slane %v1848_v6, 1 }
 0x21b   :  { %v1832_v14 = vadd.f32 %v1831_v7, %v1830_v3  ;;  %v1844_v15 = vadd.f32 %v1843_v8, %v1842_v4 }
 0x21c   :  { %v1838_v18 = vadd.f32 %v1837_v9, %v1836_v5  ;;  %v1850_v19 = vadd.f32 %v1849_v10, %v1848_v6 }
 0x21d   :  { %v1851_v20 = vmul.f32 0.125, %v1832_v14  ;;  %v1853_v11 = vmul.f32 0.125, %v1844_v15 }
 0x21e   :  { %v1852_v21 = vmul.f32 0.125, %v1838_v18  ;;  %v1854_v22 = vmul.f32 0.125, %v1850_v19 }
 0x21f   :  { %v1855_v23 = vadd.f32 1e-05, %v1851_v20  ;;  %v1857_v24 = vadd.f32 1e-05, %v1853_v11 }
 0x220   :  { %v1856_v25 = vadd.f32 1e-05, %v1852_v21  ;;  %v1858_v26 = vadd.f32 1e-05, %v1854_v22  ;;  %v3245_v21 = vld [vmem:[#allocation8] sm:$0xff]   ;;  %v3391_v22 = vmov 0.0  }
 0x221   :  { %3253 = vrsqrt.f32 %v1855_v23  ;;  %2813 = vmatprep.subr.bf16.mxu0 %v3391_v22  ;;  %v3246_v23 = vld [vmem:[#allocation8 + $0x8] sm:$0xff]  }
 0x222   :  { %3255 = vrsqrt.f32 %v1857_v24  ;;  %v3247_v24 = vld [vmem:[#allocation8 + $0x10] sm:$0xff]  }
 0x223   :  { %3257 = vrsqrt.f32 %v1856_v25  ;;  %v3248_v25 = vld [vmem:[#allocation8 + $0x18] sm:$0xff]  }
 0x224   :  { %3259 = vrsqrt.f32 %v1858_v26  ;;  %v3249_v26 = vld [vmem:[#allocation8 + $0x20] sm:$0xff]  }
 0x22b   :  { %v3254_v32 = vpop.eup %3253 }
 0x22c   :  { %v3256_v33 = vpop.eup %3255 }
 0x22d   :  { %v3258_v35 = vpop.eup %3257 }
 0x22e   :  { %v3260_v36 = vpop.eup %3259  ;;  %v1867_v37 = vcombine.low %v3254_v32, %v3258_v35 }
 0x22f   :  { %v1868_v38 = vcombine.low %v3256_v33, %v3260_v36 }
 0x230   :  { %v1875_v39 = vrot.slane %v1867_v37, %v1874_v34 }
 0x231   :  { %v1882_v40 = vrot.slane %v1868_v38, %v1874_v34 }
 0x233   :  { %v1883_v41 = vcombine.low %v1875_v39, %v1882_v40 }
 0x235   :  { %v1890_v48 = vrot.slane %v1883_v41, %v1874_v34 }
 0x237   :  { %v1892_v52 = vmul.f32 %v1890_v48, %v1788_v42 }
 0x239   :  { %v1905_v53 = vrot.slane %v1892_v52, %v1904_v47  ;;  %v1909_v54 = vrot.slane %v1892_v52, %v1908_v49  ;;  %v1897_v55 = vrot.slane %v1892_v52, %v3539_v50  ;;  %v1901_v56 = vrot.slane %v1892_v52, %v1900_v51 }
 0x23b   :  { %v1916_v57 = vmul.f32 %v1905_v53, %v3522_v44  ;;  %v1917_v58 = vmul.f32 %v1909_v54, %v3526_v46  ;;  %v1951_v59 = vmul.f32 %v1909_v54, %v3512_v17  ;;  %v1914_v60 = vmul.f32 %v1897_v55, %v3520_v43  ;;  %v1789_v44 = vld [vmem:[%s3580_s3] sm:$0xf] }
 0x23c   :  { %v1915_v61 = vmul.f32 %v1901_v56, %v3524_v45  ;;  %v1949_v62 = vmul.f32 %v1901_v56, %v3510_v16  ;;  %v1948_v63 = vmul.f32 %v1897_v55, %v3504_v12  ;;  %v1950_v0 = vmul.f32 %v1905_v53, %v3506_v13 }
 0x23d   :  { %v1923_v1 = vcombine.low %v1916_v57, %v1917_v58 }
 0x23e   :  { %v1922_v2 = vcombine.low %v1914_v60, %v1915_v61 }
 0x23f   :  { %v1937_v3 = vrot.slane %v1923_v1, %v1874_v34 }
 0x240   :  { %v1930_v4 = vrot.slane %v1922_v2, %v1874_v34  ;;  %v2322_v2 = vld [vmem:[%s3583_s6] sm:$0x1] }
 0x242   :  { %v1938_v5 = vcombine.low %v1930_v4, %v1937_v3 }
 0x244   :  { %v1945_v17 = vrot.slane %v1938_v5, %v1874_v34 }
 0x246   :  { %v1947_v46 = vsub.f32 %v1789_v44, %v1945_v17 }
 0x248   :  { %v1960_v43 = vrot.slane %v1947_v46, %v1900_v51  ;;  %v1968_v6 = vrot.slane %v1947_v46, %v1908_v49  ;;  %v1956_v45 = vrot.slane %v1947_v46, %v3539_v50  ;;  %v1964_v16 = vrot.slane %v1947_v46, %v1904_v47 }
 0x24a   :  { %v1974_v7 = vadd.f32 %v1960_v43, %v1949_v62  ;;  %v1976_v12 = vadd.f32 %v1968_v6, %v1951_v59  ;;  %v1973_v8 = vadd.f32 %v1956_v45, %v1948_v63  ;;  %v1975_v13 = vadd.f32 %v1964_v16, %v1950_v0  ;;  %v2321_v63 = vld [vmem:[%s3582_s5] sm:$0x1]  ;;  %s3393_s5 = smov [#allocation10]  }
 0x24b   :  { %v2751_v6 = vld [vmem:[%s3585_s8] ss:$0 sm:$0xff]  ;;  %s2477_s22 = sshll.u32 %s3393_s5, 4  ;;  %s2478_s22 = int_to_ptr.vmem [resolvable:$true] %s2477_s22 }
 0x24c   :  { %v1978_v9 = vmax.f32 %v1974_v7, 0.0  ;;  %v1980_v10 = vmax.f32 %v1976_v12, 0.0  ;;  %v1977_v14 = vmax.f32 %v1973_v8, 0.0  ;;  %v1979_v15 = vmax.f32 %v1975_v13, 0.0  ;;  %s3351_s6 = scalar_lea.vmem %s2478_s22, 128  ;;  %p3356_p5 = scmp.lt.s32.totalorder %s2478_s22, %s2478_s22 }
 0x24d   :  { %p3352_p4 = scmp.ne.s32.totalorder %s2478_s22, %s3351_s6  ;;  %p3357_p6 = scmp.lt.s32.totalorder %s3351_s6, %s3351_s6 }
 0x24e   :  { %v1982_v18 = vpack.c.bf16 %v1978_v9, %v1978_v9  ;;  %v1984_v19 = vpack.c.bf16 %v1980_v10, %v1980_v10  ;;  %v1981_v20 = vpack.c.bf16 %v1977_v14, %v1977_v14  ;;  %v1983_v11 = vpack.c.bf16 %v1979_v15, %v1979_v15 }
 0x24f   :  { %p3358_p7 = por %p3357_p6, %p3356_p5 }
 0x250   :  { %2273 = vmatprep.mubr.bf16.mxu0 %v1982_v18  ;;  %2313 = vmatprep.mubr.bf16.mxu1 %v1984_v19 }
 0x251   :  { %2274 = vmatmul.mubr.bf16.vlgmr.msra.gmra.mrb[4].mxu0 %v1981_v20  ;;  %2314 = vmatmul.mubr.bf16.vlgmr.msra.gmra.mrb[4].mxu1 %v1983_v11  ;;  %p3359_p8 = pnand %p3358_p7, %p3352_p4 }
 0x252   :  { %2814 = vmatpush3.bf16.msra.mxu0 %v3245_v21  ;;  %2829 = vmatprep.mubr.msk.bf16.mxu0 %vm3392_vm0, %v3391_v22 }
 0x253   :  { %2815 = vmatprep.subr.bf16.mxu0 %v3391_v22 }
 0x256   :  { %2816 = vmatpush3.bf16.msra.mxu0 %v3246_v23 }
 0x257   :  { %2817 = vmatprep.subr.bf16.mxu0 %v3391_v22 }
 0x25a   :  { %2818 = vmatpush3.bf16.msra.mxu0 %v3247_v24 }
 0x25b   :  { %2819 = vmatprep.subr.bf16.mxu0 %v3391_v22 }
 0x25e   :  { %2820 = vmatpush3.bf16.msra.mxu0 %v3248_v25 }
 0x25f   :  { %2821 = vmatprep.subr.bf16.mxu0 %v3391_v22 }
 0x262   :  { %2822 = vmatpush3.bf16.msra.mxu0 %v3249_v26 }
 0x263   :  { %2823 = vmatprep.subr.bf16.mxu0 %v3391_v22 }
 0x266   :  { %2824 = vmatpush3.bf16.msra.mxu0 %v3250_v27 }
 0x267   :  { %2825 = vmatprep.subr.bf16.mxu0 %v3391_v22 }
 0x26a   :  { %2826 = vmatpush3.bf16.msra.mxu0 %v3251_v28 }
 0x26b   :  { %2827 = vmatprep.subr.bf16.mxu0 %v3391_v22 }
 0x26e   :  { %2828 = vmatpush3.bf16.msra.mxu0 %v3252_v29 }
 0x324   :  { %v2776_v30 = vpop.f32.mrb[4].mxu0  ;;  %v2798_v31 = vpop.f32.mrb[4].mxu1 }
 0x325   :  { %v2777_v32 = vpop.f32.mrb[5].mxu0  ;;  %v2799_v33 = vpop.f32.mrb[5].mxu1 }
 0x326   :  { %v2778_v34 = vadd.f32 %v2777_v32, %v2776_v30  ;;  %v2800_v35 = vadd.f32 %v2799_v33, %v2798_v31  ;;  %v2779_v36 = vpop.f32.mrb[6].mxu0  ;;  %v2801_v37 = vpop.f32.mrb[6].mxu1 }
 0x327   :  { %v2780_v38 = vpop.f32.mrb[7].mxu0  ;;  %v2802_v39 = vpop.f32.mrb[7].mxu1 }
 0x328   :  { %v2316_v40 = vadd.f32 %v2800_v35, %v2778_v34 }
 0x32a   :  { %v2323_v41 = vrot.slane %v2316_v40, 4 }
 0x32c   :  { %v2324_v42 = vadd.f32 %v2323_v41, %v2316_v40 }
 0x32e   :  { %v2325_v47 = vrot.slane %v2324_v42, 2 }
 0x330   :  { %v2326_v48 = vadd.f32 %v2325_v47, %v2324_v42 }
 0x332   :  { %v2327_v49 = vrot.slane %v2326_v48, 1 }
 0x334   :  { %v2328_v51 = vadd.f32 %v2327_v49, %v2326_v48 }
 0x336   :  { %v2329_v52 = vmul.f32 0.125, %v2328_v51 }
 0x338   :  { %v2330_v53 = vsub.f32 %v2316_v40, %v2329_v52 }
 0x33a   :  { %v2331_v54 = vmul.f32 %v2330_v53, %v2330_v53 }
 0x33c   :  { %v2332_v55 = vrot.slane %v2331_v54, 4 }
 0x33e   :  { %v2333_v56 = vadd.f32 %v2332_v55, %v2331_v54 }
 0x340   :  { %v2334_v57 = vrot.slane %v2333_v56, 2 }
 0x342   :  { %v2335_v58 = vadd.f32 %v2334_v57, %v2333_v56 }
 0x344   :  { %v2336_v59 = vrot.slane %v2335_v58, 1 }
 0x346   :  { %v2337_v60 = vadd.f32 %v2336_v59, %v2335_v58 }
 0x348   :  { %v2338_v61 = vmul.f32 0.125, %v2337_v60 }
 0x34a   :  { %v2339_v62 = vadd.f32 1e-05, %v2338_v61 }
 0x34c   :  { %3261 = vrsqrt.f32 %v2339_v62 }
 0x356   :  { %v3262_v0 = vpop.eup %3261 }
 0x357   :  { %v2341_v1 = vmul.f32 %v3262_v0, %v2321_v63 }
 0x359   :  { %v2342_v3 = vmul.f32 %v2341_v1, %v2329_v52  ;;  %v2348_v4 = vrot.slane %v2341_v1, %v3539_v50 }
 0x35b   :  { %v2343_v5 = vsub.f32 %v2322_v2, %v2342_v3  ;;  %v2350_v44 = vmul.f32 %v2348_v4, %v2316_v40 }
 0x35d   :  { %v2355_v17 = vrot.slane %v2343_v5, %v3539_v50 }
 0x35f   :  { %v2357_v46 = vadd.f32 %v2355_v17, %v2350_v44 }
 0x361   :  { %v2358_v43 = vpack.c.bf16 %v2357_v46, %v2357_v46 }
 0x363   :  { %2830 = vmatmul.mubr.bf16.vlgmr.msra.gmra.mrb[8].mxu0 %v2358_v43 }
 0x436   :  { %v2464_v45 = vpop.f32.mrb[8].mxu0 }
 0x437   :  { %v2465_v16 = vadd.f32 %v2751_v6, %v2464_v45  ;;  %v2831_v7 = vpop.f32.mrb[9].mxu0 }
 0x438   :  { %v2467_v12 = vpop.f32.mrb[10].mxu0 }
 0x439   :  { %2470 = vst [vmem:[#allocation10] sm:$0xff] %v2465_v16  ;;  %v2832_v8 = vpop.f32.mrb[11].mxu0 }
 0x43a   :  { %3362 = shalt.err (!%p3359_p8)
}
 0x43b   :  { %s3363_s8 = scalar_lea.hbm %s3586_s9, 128 }
 0x43c   :  { %p3364_p9 = scmp.ne.s32.totalorder %s3586_s9, %s3363_s8  ;;  %p3367_p10 = scmp.lt.u32.totalorder %s3363_s8, %s3586_s9 }
 0x43e   :  { %p3369_p11 = pnand %p3367_p10, %p3364_p9 }
 0x440   :  { %3372 = shalt.err (!%p3369_p11)
}
 0x441   :  { %2480 = dma.vmem_to_hbm [thread:$0]  %s2478_s22, 128, %s3586_s9, [#allocation4]  }
 0x442   :  { %3379 = dma.done.wait [#allocation4], 128  }
 0x443   :  { %3380 = vsyncadd [#allocation4], 4294967168 }
 0x444   :  { %2484 = vsyncpa [#allocation3], 1 }
 0x445   :  { %2485 = vsyncpa [#allocation6], 1 }
 0x446   :  { %2486 = vsyncpa [#allocation9], 1 }
 0x447   :  { %2487 = vsyncpa [#allocation4], 1 }

</bundles_post_ra>
